<compile_context>
chip_gen: v6e
topology: v6e:2x2x1
jax: 0.10.0
libtpu: 0.0.40
codegen_flags: <defaults>
</compile_context>

<pallas_src>
import numpy as np
import jax
import jax.numpy as jnp
from jax import lax
from jax.experimental import pallas as pl
from jax.experimental.pallas import tpu as pltpu

D_MODEL = 32
MAX_TARGETS = 4
SEQ_LEN = 8
HIDDEN = 512                 # fixed by nn.Linear(input_dim, 512) in _init_decay_gate
CORE_THRESHOLD = 0.95        # non-CUDA branch of the reference code


def _targeted_surprise_kernel(x_ref, te_ref, psf_ref, psbar_ref, expand_ref,
                              w1_ref, b1_ref, w2_ref, b2_ref, ts_ref, nh_ref):
    S, D = x_ref.shape
    T = te_ref.shape[0]

    x = x_ref[...]                           # [S, D]  raw token embeddings
    te = te_ref[...]                         # [T, D]  keyword-patched target embeddings
    psf = psf_ref[...]                       # [1, T*D] position state, (t,d) on lanes
    psbar = psbar_ref[...]                   # [1, T]  mean_d(position_state)

    # ---- cosine similarity: rsqrt row-normalization (EUP) + MXU matmul ----
    xn = x * lax.rsqrt(jnp.sum(x * x, axis=1, keepdims=True))
    ten = te * lax.rsqrt(jnp.sum(te * te, axis=1, keepdims=True))
    sim = lax.dot_general(xn, ten, (((1,), (1,)), ((), ())),
                          preferred_element_type=jnp.float32)               # [S, T]

    # softmax over targets; approx reciprocal lives on the otherwise-idle EUP slot
    e = jnp.exp(sim - jnp.max(sim, axis=1, keepdims=True))
    tw = e * pl.reciprocal(jnp.sum(e, axis=1, keepdims=True), approx=True)  # [S, T]

    # ---- decay gate (exact f32: feeds the 0.95 hard threshold) ----
    h = jnp.maximum(
        jnp.dot(x, w1_ref[...], preferred_element_type=jnp.float32) + b1_ref[...],
        0.0)                                                                # [S, H]
    g = jnp.sum(h * w2_ref[...], axis=1, keepdims=True) + b2_ref[0]         # [S, 1]
    alpha = 1.0 / (1.0 + jnp.exp(-g))                                       # [S, 1]

    # expand tw over d with the precomputed (T, T*D) one-hot expansion matrix
    tw_exp = jnp.dot(tw, expand_ref[...], preferred_element_type=jnp.float32)  # [S, T*D]

    # ---- k-invariant precompute (done once) ----
    # new_hidden[k,i,j,(t,d)]   = core[k]*alpha[i]*tw[j,t] + alpha[i]*ps[t,d]
    # target_surprise[k,i,j,t]  = core[k]*alpha[i]*tw[j,t] - (1-alpha[i])*mean_d(ps[t,:])
    a_nh = alpha[:, :, None] * tw_exp[None, :, :]           # [S, S, T*D]
    b_nh = (alpha * psf)[:, None, :]                        # [S, 1, T*D]
    a_ts = alpha[:, :, None] * tw[None, :, :]               # [S, S, T]
    b_ts = ((1.0 - alpha) * psbar)[:, None, :]              # [S, 1, T]

    # ---- statically unrolled loop over the core-mask index k ----
    for k in range(S):
        core_k = (alpha[k:k + 1, 0:1] > CORE_THRESHOLD).astype(jnp.float32)  # [1, 1]
        nh_ref[k] = core_k * a_nh + b_nh                    # [S, S, T*D]
        ts_ref[k] = core_k * a_ts - b_ts                    # [S, S, T]


@jax.jit
def targeted_surprise_forward(x_emb, position_state, target_embeddings,
                              w1, b1, w2, b2):
    x_emb = x_emb.astype(jnp.float32)
    target_embeddings = target_embeddings.astype(jnp.float32)
    S, D = x_emb.shape
    T = target_embeddings.shape[0]
    H = w1.shape[1]
    TD = T * D

    # Layout plumbing + k-invariant constants (pure metadata / tiny precompute,
    # outside the kernel):
    ps = position_state.astype(jnp.float32)
    ps_flat = ps.reshape(1, TD)                                   # (t,d) lane fold
    psbar = jnp.mean(ps, axis=1).reshape(1, T)                    # mean over d
    expand = (jnp.arange(TD, dtype=jnp.int32)[None, :] // D
              == jnp.arange(T, dtype=jnp.int32)[:, None]).astype(jnp.float32)  # (T, TD)
    b1_row = b1.astype(jnp.float32).reshape(1, H)
    w2_row = w2.astype(jnp.float32).reshape(1, H)
    b2_s = b2.astype(jnp.float32).reshape(1)

    vmem = pl.BlockSpec(memory_space=pltpu.MemorySpace.VMEM)
    ts4, nh4 = pl.pallas_call(
        _targeted_surprise_kernel,
        in_specs=[
            vmem,                                                  # x_emb
            vmem,                                                  # target embeddings
            vmem,                                                  # position state (flat)
            vmem,                                                  # psbar
            vmem,                                                  # expansion matrix
            vmem,                                                  # decay gate W1
            vmem,                                                  # decay gate b1
            vmem,                                                  # decay gate W2 as a row
            pl.BlockSpec(memory_space=pltpu.MemorySpace.SMEM),     # decay gate b2 (scalar)
        ],
        out_specs=(vmem, vmem),
        out_shape=(
            jax.ShapeDtypeStruct((S, S, S, T), jnp.float32),       # target_surprise
            jax.ShapeDtypeStruct((S, S, S, TD), jnp.float32),      # new_hidden (lane-dense)
        ),
    )(x_emb, target_embeddings, ps_flat, psbar, expand, w1, b1_row, w2_row, b2_s)

    target_surprise = ts4.reshape(1, 1, S, S, S, T)   # matches torch [1,1,S,S,S,T]
    new_hidden = nh4.reshape(1, S, S, S, T, D)        # matches torch [1,S,S,S,T,D]
    return target_surprise, new_hidden


def build_target_embeddings(target_queries, keywords, d_model):
    """Mirror of the keyword -> embedding patching loop in forward()."""
    # TODO(synk): jieba tokenization + TF-IDF keyword extraction and Python's
    # salted hash() have no JAX/Pallas equivalent; keywords are synthetic and
    # hash() is replaced by a deterministic ord()-based stand-in.
    te = np.asarray(target_queries, dtype=np.float32).copy()
    for i, kw in enumerate(keywords):
        chars = list(kw)
        for j in range(min(len(chars), d_model // 2)):
            te[i, 2 * j] = float(len(chars[j]))                 # single char -> 1.0
            te[i, 2 * j + 1] = float((ord(chars[j]) * 131) % 100)
    return jnp.asarray(te)


def reference_forward(x_emb, position_state, target_embeddings, w1, b1, w2, b2):
    """Plain-JAX transliteration of the PyTorch broadcasting semantics."""
    x = x_emb.astype(jnp.float32)
    xn = x / jnp.linalg.norm(x, axis=1, keepdims=True)
    ten = target_embeddings / jnp.linalg.norm(target_embeddings, axis=1, keepdims=True)
    sim = xn @ ten.T                                             # [S, T]
    h = jnp.maximum(x @ w1 + b1, 0.0)
    g = h @ w2 + b2                                              # [S, 1]
    alpha = jax.nn.sigmoid(g)[..., None]                         # [S, 1, 1]
    core_mask = (alpha > CORE_THRESHOLD).astype(jnp.float32)     # [S, 1, 1]
    pos5 = position_state.astype(jnp.float32)[None, None, None]  # [1, 1, 1, T, D]
    tw = jax.nn.softmax(sim, axis=-1)[..., None][None][None]     # [1, 1, S, T, 1]
    ca = alpha[..., None][None][None]                            # [1, 1, S, 1, 1, 1]
    cm = core_mask[..., None][..., None][None][None]             # [1, 1, S, 1, 1, 1, 1]
    surprise = tw * ca * cm - pos5 * (1.0 - ca)                  # [1, 1, S, S, S, T, D]
    new_hidden = jnp.squeeze(pos5, 0) + jnp.mean(surprise, axis=0)
    target_surprise = jnp.mean(surprise, axis=-1)
    return target_surprise, new_hidden


if __name__ == "__main__":
    key = jax.random.PRNGKey(0)
    k_tq, k_x, k_ps, k_w1, k_b1, k_w2 = jax.random.split(key, 6)

    # module parameters (deterministic synthetic init; shapes from __init__)
    target_queries = jax.random.normal(k_tq, (MAX_TARGETS, D_MODEL), jnp.float32)
    w1 = jax.random.normal(k_w1, (D_MODEL, HIDDEN), jnp.float32) * 0.1
    b1 = jax.random.normal(k_b1, (HIDDEN,), jnp.float32) * 0.1
    w2 = jax.random.normal(k_w2, (HIDDEN, 1), jnp.float32) * 0.2
    b2 = jnp.full((1,), 3.0, jnp.float32)   # near sigmoid(3)=0.953 so core_mask is mixed

    # forward inputs
    x_emb = jax.random.normal(k_x, (SEQ_LEN, D_MODEL), jnp.float32)
    position_state = jax.random.normal(k_ps, (MAX_TARGETS, D_MODEL), jnp.float32)

    # stand-in for tfidf_analysis(target_texts) keyword extraction
    keywords = ["alpha", "beta", "gamma", "delta"][:MAX_TARGETS]
    target_embeddings = build_target_embeddings(target_queries, keywords, D_MODEL)

    ts, nh = targeted_surprise_forward(x_emb, position_state, target_embeddings,
                                       w1, b1, w2, b2)
    jax.block_until_ready((ts, nh))

    assert ts.shape == (1, 1, SEQ_LEN, SEQ_LEN, SEQ_LEN, MAX_TARGETS), ts.shape
    assert nh.shape == (1, SEQ_LEN, SEQ_LEN, SEQ_LEN, MAX_TARGETS, D_MODEL), nh.shape

    ts_ref, nh_ref = reference_forward(x_emb, position_state, target_embeddings,
                                       w1, b1, w2, b2)
    np.testing.assert_allclose(np.asarray(ts), np.asarray(ts_ref), rtol=1e-3, atol=1e-3)
    np.testing.assert_allclose(np.asarray(nh), np.asarray(nh_ref), rtol=1e-3, atol=1e-3)

    print("KERNEL_OK")
</pallas_src>

<mosaic_0001>
module attributes {stable_mosaic.version = 11 : i64} {
  func.func @_targeted_surprise_kernel(%arg0: memref<8x32xf32, #tpu.memory_space<vmem>>, %arg1: memref<4x32xf32, #tpu.memory_space<vmem>>, %arg2: memref<1x128xf32, #tpu.memory_space<vmem>>, %arg3: memref<1x4xf32, #tpu.memory_space<vmem>>, %arg4: memref<4x128xf32, #tpu.memory_space<vmem>>, %arg5: memref<32x512xf32, #tpu.memory_space<vmem>>, %arg6: memref<1x512xf32, #tpu.memory_space<vmem>>, %arg7: memref<1x512xf32, #tpu.memory_space<vmem>>, %arg8: memref<1xf32, #tpu.memory_space<smem>>, %arg9: memref<8x8x8x4xf32, #tpu.memory_space<vmem>>, %arg10: memref<8x8x8x128xf32, #tpu.memory_space<vmem>>) attributes {dimension_semantics = [], scalar_prefetch = 0 : i64, scratch_operands = 0 : i64, tpu.core_type = #tpu.core_type<tc>} {
    %c0 = arith.constant 0 : index
    %c0_0 = arith.constant 0 : index
    %0 = vector.load %arg0[%c0, %c0_0] : memref<8x32xf32, #tpu.memory_space<vmem>>, vector<8x32xf32>
    %c0_1 = arith.constant 0 : index
    %c0_2 = arith.constant 0 : index
    %1 = vector.load %arg1[%c0_1, %c0_2] : memref<4x32xf32, #tpu.memory_space<vmem>>, vector<4x32xf32>
    %c0_3 = arith.constant 0 : index
    %c0_4 = arith.constant 0 : index
    %2 = vector.load %arg2[%c0_3, %c0_4] : memref<1x128xf32, #tpu.memory_space<vmem>>, vector<1x128xf32>
    %c0_5 = arith.constant 0 : index
    %c0_6 = arith.constant 0 : index
    %3 = vector.load %arg3[%c0_5, %c0_6] : memref<1x4xf32, #tpu.memory_space<vmem>>, vector<1x4xf32>
    %4 = arith.mulf %0, %0 : vector<8x32xf32>
    %cst = arith.constant dense<0.000000e+00> : vector<8xf32>
    %5 = vector.multi_reduction <add>, %4, %cst [1] : vector<8x32xf32> to vector<8xf32>
    %6 = vector.shape_cast %5 : vector<8xf32> to vector<8x1xf32>
    %7 = math.rsqrt %6 : vector<8x1xf32>
    %8 = vector.broadcast %7 : vector<8x1xf32> to vector<8x32xf32>
    %9 = arith.mulf %0, %8 : vector<8x32xf32>
    %10 = arith.mulf %1, %1 : vector<4x32xf32>
    %cst_7 = arith.constant dense<0.000000e+00> : vector<4xf32>
    %11 = vector.multi_reduction <add>, %10, %cst_7 [1] : vector<4x32xf32> to vector<4xf32>
    %12 = vector.shape_cast %11 : vector<4xf32> to vector<4x1xf32>
    %13 = math.rsqrt %12 : vector<4x1xf32>
    %14 = vector.broadcast %13 : vector<4x1xf32> to vector<4x32xf32>
    %15 = arith.mulf %1, %14 : vector<4x32xf32>
    %cst_8 = arith.constant dense<0.000000e+00> : vector<8x4xf32>
    %16 = tpu.matmul %9, %15, %cst_8 {dimension_numbers = #tpu.dot_dimension_numbers<[1], [1], [0], [0], [0, 0, 1, 0], [], []>} : vector<8x32xf32>, vector<4x32xf32>, vector<8x4xf32> -> vector<8x4xf32>
    %cst_9 = arith.constant dense<0xFF800000> : vector<8xf32>
    %17 = vector.multi_reduction <maximumf>, %16, %cst_9 [1] : vector<8x4xf32> to vector<8xf32>
    %18 = vector.shape_cast %17 : vector<8xf32> to vector<8x1xf32>
    %19 = vector.broadcast %18 : vector<8x1xf32> to vector<8x4xf32>
    %20 = arith.subf %16, %19 : vector<8x4xf32>
    %21 = math.exp %20 : vector<8x4xf32>
    %cst_10 = arith.constant dense<0.000000e+00> : vector<8xf32>
    %22 = vector.multi_reduction <add>, %21, %cst_10 [1] : vector<8x4xf32> to vector<8xf32>
    %23 = vector.shape_cast %22 : vector<8xf32> to vector<8x1xf32>
    %24 = tpu.reciprocal %23 {approx = true} : vector<8x1xf32> -> vector<8x1xf32>
    %25 = vector.broadcast %24 : vector<8x1xf32> to vector<8x4xf32>
    %26 = arith.mulf %21, %25 : vector<8x4xf32>
    %c0_11 = arith.constant 0 : index
    %c0_12 = arith.constant 0 : index
    %27 = vector.load %arg5[%c0_11, %c0_12] : memref<32x512xf32, #tpu.memory_space<vmem>>, vector<32x512xf32>
    %cst_13 = arith.constant dense<0.000000e+00> : vector<8x512xf32>
    %28 = tpu.matmul %0, %27, %cst_13 {dimension_numbers = #tpu.dot_dimension_numbers<[1], [0], [0], [1], [0, 0, 1, 1], [], []>} : vector<8x32xf32>, vector<32x512xf32>, vector<8x512xf32> -> vector<8x512xf32>
    %c0_14 = arith.constant 0 : index
    %c0_15 = arith.constant 0 : index
    %29 = vector.load %arg6[%c0_14, %c0_15] : memref<1x512xf32, #tpu.memory_space<vmem>>, vector<1x512xf32>
    %30 = vector.broadcast %29 : vector<1x512xf32> to vector<8x512xf32>
    %31 = arith.addf %28, %30 : vector<8x512xf32>
    %cst_16 = arith.constant 0.000000e+00 : f32
    %32 = vector.broadcast %cst_16 : f32 to vector<8x512xf32>
    %33 = arith.maximumf %31, %32 : vector<8x512xf32>
    %c0_17 = arith.constant 0 : index
    %c0_18 = arith.constant 0 : index
    %34 = vector.load %arg7[%c0_17, %c0_18] : memref<1x512xf32, #tpu.memory_space<vmem>>, vector<1x512xf32>
    %35 = vector.broadcast %34 : vector<1x512xf32> to vector<8x512xf32>
    %36 = arith.mulf %33, %35 : vector<8x512xf32>
    %cst_19 = arith.constant dense<0.000000e+00> : vector<8xf32>
    %37 = vector.multi_reduction <add>, %36, %cst_19 [1] : vector<8x512xf32> to vector<8xf32>
    %38 = vector.shape_cast %37 : vector<8xf32> to vector<8x1xf32>
    %c0_20 = arith.constant 0 : index
    %39 = memref.load %arg8[%c0_20] : memref<1xf32, #tpu.memory_space<smem>>
    %40 = vector.broadcast %39 : f32 to vector<8x1xf32>
    %41 = arith.addf %38, %40 : vector<8x1xf32>
    %cst_21 = arith.constant 0.000000e+00 : f32
    %42 = vector.broadcast %cst_21 : f32 to vector<8x1xf32>
    %43 = arith.subf %42, %41 : vector<8x1xf32>
    %44 = math.exp %43 : vector<8x1xf32>
    %cst_22 = arith.constant 1.000000e+00 : f32
    %45 = vector.broadcast %cst_22 : f32 to vector<8x1xf32>
    %46 = arith.addf %45, %44 : vector<8x1xf32>
    %cst_23 = arith.constant 1.000000e+00 : f32
    %47 = vector.broadcast %cst_23 : f32 to vector<8x1xf32>
    %48 = arith.divf %47, %46 : vector<8x1xf32>
    %c0_24 = arith.constant 0 : index
    %c0_25 = arith.constant 0 : index
    %49 = vector.load %arg4[%c0_24, %c0_25] : memref<4x128xf32, #tpu.memory_space<vmem>>, vector<4x128xf32>
    %cst_26 = arith.constant dense<0.000000e+00> : vector<8x128xf32>
    %50 = tpu.matmul %26, %49, %cst_26 {dimension_numbers = #tpu.dot_dimension_numbers<[1], [0], [0], [1], [0, 0, 1, 1], [], []>} : vector<8x4xf32>, vector<4x128xf32>, vector<8x128xf32> -> vector<8x128xf32>
    %51 = vector.shape_cast %48 : vector<8x1xf32> to vector<8x1x1xf32>
    %52 = vector.shape_cast %50 : vector<8x128xf32> to vector<1x8x128xf32>
    %53 = vector.broadcast %51 : vector<8x1x1xf32> to vector<8x8x128xf32>
    %54 = vector.broadcast %52 : vector<1x8x128xf32> to vector<8x8x128xf32>
    %55 = arith.mulf %53, %54 : vector<8x8x128xf32>
    %56 = vector.broadcast %48 : vector<8x1xf32> to vector<8x128xf32>
    %57 = vector.broadcast %2 : vector<1x128xf32> to vector<8x128xf32>
    %58 = arith.mulf %56, %57 : vector<8x128xf32>
    %59 = vector.shape_cast %58 : vector<8x128xf32> to vector<8x1x128xf32>
    %60 = vector.shape_cast %48 : vector<8x1xf32> to vector<8x1x1xf32>
    %61 = vector.shape_cast %26 : vector<8x4xf32> to vector<1x8x4xf32>
    %62 = vector.broadcast %60 : vector<8x1x1xf32> to vector<8x8x4xf32>
    %63 = vector.broadcast %61 : vector<1x8x4xf32> to vector<8x8x4xf32>
    %64 = arith.mulf %62, %63 : vector<8x8x4xf32>
    %cst_27 = arith.constant 1.000000e+00 : f32
    %65 = vector.broadcast %cst_27 : f32 to vector<8x1xf32>
    %66 = arith.subf %65, %48 : vector<8x1xf32>
    %67 = vector.broadcast %66 : vector<8x1xf32> to vector<8x4xf32>
    %68 = vector.broadcast %3 : vector<1x4xf32> to vector<8x4xf32>
    %69 = arith.mulf %67, %68 : vector<8x4xf32>
    %70 = vector.shape_cast %69 : vector<8x4xf32> to vector<8x1x4xf32>
    %71 = vector.extract_strided_slice %48 {offsets = [0, 0], sizes = [1, 1], strides = [1, 1]} : vector<8x1xf32> to vector<1x1xf32>
    %cst_28 = arith.constant 0.949999988 : f32
    %72 = vector.broadcast %cst_28 : f32 to vector<1x1xf32>
    %73 = arith.cmpf ogt, %71, %72 : vector<1x1xf32>
    %74 = arith.extui %73 : vector<1x1xi1> to vector<1x1xi32>
    %75 = arith.sitofp %74 : vector<1x1xi32> to vector<1x1xf32>
    %76 = vector.shape_cast %75 : vector<1x1xf32> to vector<1x1x1xf32>
    %77 = vector.broadcast %76 : vector<1x1x1xf32> to vector<8x8x128xf32>
    %78 = arith.mulf %77, %55 : vector<8x8x128xf32>
    %79 = vector.broadcast %59 : vector<8x1x128xf32> to vector<8x8x128xf32>
    %80 = arith.addf %78, %79 : vector<8x8x128xf32>
    %c0_29 = arith.constant 0 : index
    %c0_30 = arith.constant 0 : index
    %c0_31 = arith.constant 0 : index
    %c0_32 = arith.constant 0 : index
    %81 = vector.load %arg10[%c0_29, %c0_30, %c0_31, %c0_32] : memref<8x8x8x128xf32, #tpu.memory_space<vmem>>, vector<1x8x8x128xf32>
    %82 = vector.shape_cast %81 : vector<1x8x8x128xf32> to vector<8x8x128xf32>
    %83 = vector.shape_cast %80 : vector<8x8x128xf32> to vector<1x8x8x128xf32>
    tpu.vector_store %arg10[%c0_29, %c0_30, %c0_31, %c0_32], %83 {strides = array<i32>} : memref<8x8x8x128xf32, #tpu.memory_space<vmem>>, vector<1x8x8x128xf32>,
    %84 = vector.shape_cast %75 : vector<1x1xf32> to vector<1x1x1xf32>
    %85 = vector.broadcast %84 : vector<1x1x1xf32> to vector<8x8x4xf32>
    %86 = arith.mulf %85, %64 : vector<8x8x4xf32>
    %87 = vector.broadcast %70 : vector<8x1x4xf32> to vector<8x8x4xf32>
    %88 = arith.subf %86, %87 : vector<8x8x4xf32>
    %c0_33 = arith.constant 0 : index
    %c0_34 = arith.constant 0 : index
    %c0_35 = arith.constant 0 : index
    %c0_36 = arith.constant 0 : index
    %89 = vector.load %arg9[%c0_33, %c0_34, %c0_35, %c0_36] : memref<8x8x8x4xf32, #tpu.memory_space<vmem>>, vector<1x8x8x4xf32>
    %90 = vector.shape_cast %89 : vector<1x8x8x4xf32> to vector<8x8x4xf32>
    %91 = vector.shape_cast %88 : vector<8x8x4xf32> to vector<1x8x8x4xf32>
    tpu.vector_store %arg9[%c0_33, %c0_34, %c0_35, %c0_36], %91 {strides = array<i32>} : memref<8x8x8x4xf32, #tpu.memory_space<vmem>>, vector<1x8x8x4xf32>,
    %92 = vector.extract_strided_slice %48 {offsets = [1, 0], sizes = [1, 1], strides = [1, 1]} : vector<8x1xf32> to vector<1x1xf32>
    %cst_37 = arith.constant 0.949999988 : f32
    %93 = vector.broadcast %cst_37 : f32 to vector<1x1xf32>
    %94 = arith.cmpf ogt, %92, %93 : vector<1x1xf32>
    %95 = arith.extui %94 : vector<1x1xi1> to vector<1x1xi32>
    %96 = arith.sitofp %95 : vector<1x1xi32> to vector<1x1xf32>
    %97 = vector.shape_cast %96 : vector<1x1xf32> to vector<1x1x1xf32>
    %98 = vector.broadcast %97 : vector<1x1x1xf32> to vector<8x8x128xf32>
    %99 = arith.mulf %98, %55 : vector<8x8x128xf32>
    %100 = vector.broadcast %59 : vector<8x1x128xf32> to vector<8x8x128xf32>
    %101 = arith.addf %99, %100 : vector<8x8x128xf32>
    %c1 = arith.constant 1 : index
    %c0_38 = arith.constant 0 : index
    %c0_39 = arith.constant 0 : index
    %c0_40 = arith.constant 0 : index
    %102 = vector.load %arg10[%c1, %c0_38, %c0_39, %c0_40] : memref<8x8x8x128xf32, #tpu.memory_space<vmem>>, vector<1x8x8x128xf32>
    %103 = vector.shape_cast %102 : vector<1x8x8x128xf32> to vector<8x8x128xf32>
    %104 = vector.shape_cast %101 : vector<8x8x128xf32> to vector<1x8x8x128xf32>
    tpu.vector_store %arg10[%c1, %c0_38, %c0_39, %c0_40], %104 {strides = array<i32>} : memref<8x8x8x128xf32, #tpu.memory_space<vmem>>, vector<1x8x8x128xf32>,
    %105 = vector.shape_cast %96 : vector<1x1xf32> to vector<1x1x1xf32>
    %106 = vector.broadcast %105 : vector<1x1x1xf32> to vector<8x8x4xf32>
    %107 = arith.mulf %106, %64 : vector<8x8x4xf32>
    %108 = vector.broadcast %70 : vector<8x1x4xf32> to vector<8x8x4xf32>
    %109 = arith.subf %107, %108 : vector<8x8x4xf32>
    %c1_41 = arith.constant 1 : index
    %c0_42 = arith.constant 0 : index
    %c0_43 = arith.constant 0 : index
    %c0_44 = arith.constant 0 : index
    %110 = vector.load %arg9[%c1_41, %c0_42, %c0_43, %c0_44] : memref<8x8x8x4xf32, #tpu.memory_space<vmem>>, vector<1x8x8x4xf32>
    %111 = vector.shape_cast %110 : vector<1x8x8x4xf32> to vector<8x8x4xf32>
    %112 = vector.shape_cast %109 : vector<8x8x4xf32> to vector<1x8x8x4xf32>
    tpu.vector_store %arg9[%c1_41, %c0_42, %c0_43, %c0_44], %112 {strides = array<i32>} : memref<8x8x8x4xf32, #tpu.memory_space<vmem>>, vector<1x8x8x4xf32>,
    %113 = vector.extract_strided_slice %48 {offsets = [2, 0], sizes = [1, 1], strides = [1, 1]} : vector<8x1xf32> to vector<1x1xf32>
    %cst_45 = arith.constant 0.949999988 : f32
    %114 = vector.broadcast %cst_45 : f32 to vector<1x1xf32>
    %115 = arith.cmpf ogt, %113, %114 : vector<1x1xf32>
    %116 = arith.extui %115 : vector<1x1xi1> to vector<1x1xi32>
    %117 = arith.sitofp %116 : vector<1x1xi32> to vector<1x1xf32>
    %118 = vector.shape_cast %117 : vector<1x1xf32> to vector<1x1x1xf32>
    %119 = vector.broadcast %118 : vector<1x1x1xf32> to vector<8x8x128xf32>
    %120 = arith.mulf %119, %55 : vector<8x8x128xf32>
    %121 = vector.broadcast %59 : vector<8x1x128xf32> to vector<8x8x128xf32>
    %122 = arith.addf %120, %121 : vector<8x8x128xf32>
    %c2 = arith.constant 2 : index
    %c0_46 = arith.constant 0 : index
    %c0_47 = arith.constant 0 : index
    %c0_48 = arith.constant 0 : index
    %123 = vector.load %arg10[%c2, %c0_46, %c0_47, %c0_48] : memref<8x8x8x128xf32, #tpu.memory_space<vmem>>, vector<1x8x8x128xf32>
    %124 = vector.shape_cast %123 : vector<1x8x8x128xf32> to vector<8x8x128xf32>
    %125 = vector.shape_cast %122 : vector<8x8x128xf32> to vector<1x8x8x128xf32>
    tpu.vector_store %arg10[%c2, %c0_46, %c0_47, %c0_48], %125 {strides = array<i32>} : memref<8x8x8x128xf32, #tpu.memory_space<vmem>>, vector<1x8x8x128xf32>,
    %126 = vector.shape_cast %117 : vector<1x1xf32> to vector<1x1x1xf32>
    %127 = vector.broadcast %126 : vector<1x1x1xf32> to vector<8x8x4xf32>
    %128 = arith.mulf %127, %64 : vector<8x8x4xf32>
    %129 = vector.broadcast %70 : vector<8x1x4xf32> to vector<8x8x4xf32>
    %130 = arith.subf %128, %129 : vector<8x8x4xf32>
    %c2_49 = arith.constant 2 : index
    %c0_50 = arith.constant 0 : index
    %c0_51 = arith.constant 0 : index
    %c0_52 = arith.constant 0 : index
    %131 = vector.load %arg9[%c2_49, %c0_50, %c0_51, %c0_52] : memref<8x8x8x4xf32, #tpu.memory_space<vmem>>, vector<1x8x8x4xf32>
    %132 = vector.shape_cast %131 : vector<1x8x8x4xf32> to vector<8x8x4xf32>
    %133 = vector.shape_cast %130 : vector<8x8x4xf32> to vector<1x8x8x4xf32>
    tpu.vector_store %arg9[%c2_49, %c0_50, %c0_51, %c0_52], %133 {strides = array<i32>} : memref<8x8x8x4xf32, #tpu.memory_space<vmem>>, vector<1x8x8x4xf32>,
    %134 = vector.extract_strided_slice %48 {offsets = [3, 0], sizes = [1, 1], strides = [1, 1]} : vector<8x1xf32> to vector<1x1xf32>
    %cst_53 = arith.constant 0.949999988 : f32
    %135 = vector.broadcast %cst_53 : f32 to vector<1x1xf32>
    %136 = arith.cmpf ogt, %134, %135 : vector<1x1xf32>
    %137 = arith.extui %136 : vector<1x1xi1> to vector<1x1xi32>
    %138 = arith.sitofp %137 : vector<1x1xi32> to vector<1x1xf32>
    %139 = vector.shape_cast %138 : vector<1x1xf32> to vector<1x1x1xf32>
    %140 = vector.broadcast %139 : vector<1x1x1xf32> to vector<8x8x128xf32>
    %141 = arith.mulf %140, %55 : vector<8x8x128xf32>
    %142 = vector.broadcast %59 : vector<8x1x128xf32> to vector<8x8x128xf32>
    %143 = arith.addf %141, %142 : vector<8x8x128xf32>
    %c3 = arith.constant 3 : index
    %c0_54 = arith.constant 0 : index
    %c0_55 = arith.constant 0 : index
    %c0_56 = arith.constant 0 : index
    %144 = vector.load %arg10[%c3, %c0_54, %c0_55, %c0_56] : memref<8x8x8x128xf32, #tpu.memory_space<vmem>>, vector<1x8x8x128xf32>
    %145 = vector.shape_cast %144 : vector<1x8x8x128xf32> to vector<8x8x128xf32>
    %146 = vector.shape_cast %143 : vector<8x8x128xf32> to vector<1x8x8x128xf32>
    tpu.vector_store %arg10[%c3, %c0_54, %c0_55, %c0_56], %146 {strides = array<i32>} : memref<8x8x8x128xf32, #tpu.memory_space<vmem>>, vector<1x8x8x128xf32>,
    %147 = vector.shape_cast %138 : vector<1x1xf32> to vector<1x1x1xf32>
    %148 = vector.broadcast %147 : vector<1x1x1xf32> to vector<8x8x4xf32>
    %149 = arith.mulf %148, %64 : vector<8x8x4xf32>
    %150 = vector.broadcast %70 : vector<8x1x4xf32> to vector<8x8x4xf32>
    %151 = arith.subf %149, %150 : vector<8x8x4xf32>
    %c3_57 = arith.constant 3 : index
    %c0_58 = arith.constant 0 : index
    %c0_59 = arith.constant 0 : index
    %c0_60 = arith.constant 0 : index
    %152 = vector.load %arg9[%c3_57, %c0_58, %c0_59, %c0_60] : memref<8x8x8x4xf32, #tpu.memory_space<vmem>>, vector<1x8x8x4xf32>
    %153 = vector.shape_cast %152 : vector<1x8x8x4xf32> to vector<8x8x4xf32>
    %154 = vector.shape_cast %151 : vector<8x8x4xf32> to vector<1x8x8x4xf32>
    tpu.vector_store %arg9[%c3_57, %c0_58, %c0_59, %c0_60], %154 {strides = array<i32>} : memref<8x8x8x4xf32, #tpu.memory_space<vmem>>, vector<1x8x8x4xf32>,
    %155 = vector.extract_strided_slice %48 {offsets = [4, 0], sizes = [1, 1], strides = [1, 1]} : vector<8x1xf32> to vector<1x1xf32>
    %cst_61 = arith.constant 0.949999988 : f32
    %156 = vector.broadcast %cst_61 : f32 to vector<1x1xf32>
    %157 = arith.cmpf ogt, %155, %156 : vector<1x1xf32>
    %158 = arith.extui %157 : vector<1x1xi1> to vector<1x1xi32>
    %159 = arith.sitofp %158 : vector<1x1xi32> to vector<1x1xf32>
    %160 = vector.shape_cast %159 : vector<1x1xf32> to vector<1x1x1xf32>
    %161 = vector.broadcast %160 : vector<1x1x1xf32> to vector<8x8x128xf32>
    %162 = arith.mulf %161, %55 : vector<8x8x128xf32>
    %163 = vector.broadcast %59 : vector<8x1x128xf32> to vector<8x8x128xf32>
    %164 = arith.addf %162, %163 : vector<8x8x128xf32>
    %c4 = arith.constant 4 : index
    %c0_62 = arith.constant 0 : index
    %c0_63 = arith.constant 0 : index
    %c0_64 = arith.constant 0 : index
    %165 = vector.load %arg10[%c4, %c0_62, %c0_63, %c0_64] : memref<8x8x8x128xf32, #tpu.memory_space<vmem>>, vector<1x8x8x128xf32>
    %166 = vector.shape_cast %165 : vector<1x8x8x128xf32> to vector<8x8x128xf32>
    %167 = vector.shape_cast %164 : vector<8x8x128xf32> to vector<1x8x8x128xf32>
    tpu.vector_store %arg10[%c4, %c0_62, %c0_63, %c0_64], %167 {strides = array<i32>} : memref<8x8x8x128xf32, #tpu.memory_space<vmem>>, vector<1x8x8x128xf32>,
    %168 = vector.shape_cast %159 : vector<1x1xf32> to vector<1x1x1xf32>
    %169 = vector.broadcast %168 : vector<1x1x1xf32> to vector<8x8x4xf32>
    %170 = arith.mulf %169, %64 : vector<8x8x4xf32>
    %171 = vector.broadcast %70 : vector<8x1x4xf32> to vector<8x8x4xf32>
    %172 = arith.subf %170, %171 : vector<8x8x4xf32>
    %c4_65 = arith.constant 4 : index
    %c0_66 = arith.constant 0 : index
    %c0_67 = arith.constant 0 : index
    %c0_68 = arith.constant 0 : index
    %173 = vector.load %arg9[%c4_65, %c0_66, %c0_67, %c0_68] : memref<8x8x8x4xf32, #tpu.memory_space<vmem>>, vector<1x8x8x4xf32>
    %174 = vector.shape_cast %173 : vector<1x8x8x4xf32> to vector<8x8x4xf32>
    %175 = vector.shape_cast %172 : vector<8x8x4xf32> to vector<1x8x8x4xf32>
    tpu.vector_store %arg9[%c4_65, %c0_66, %c0_67, %c0_68], %175 {strides = array<i32>} : memref<8x8x8x4xf32, #tpu.memory_space<vmem>>, vector<1x8x8x4xf32>,
    %176 = vector.extract_strided_slice %48 {offsets = [5, 0], sizes = [1, 1], strides = [1, 1]} : vector<8x1xf32> to vector<1x1xf32>
    %cst_69 = arith.constant 0.949999988 : f32
    %177 = vector.broadcast %cst_69 : f32 to vector<1x1xf32>
    %178 = arith.cmpf ogt, %176, %177 : vector<1x1xf32>
    %179 = arith.extui %178 : vector<1x1xi1> to vector<1x1xi32>
    %180 = arith.sitofp %179 : vector<1x1xi32> to vector<1x1xf32>
    %181 = vector.shape_cast %180 : vector<1x1xf32> to vector<1x1x1xf32>
    %182 = vector.broadcast %181 : vector<1x1x1xf32> to vector<8x8x128xf32>
    %183 = arith.mulf %182, %55 : vector<8x8x128xf32>
    %184 = vector.broadcast %59 : vector<8x1x128xf32> to vector<8x8x128xf32>
    %185 = arith.addf %183, %184 : vector<8x8x128xf32>
    %c5 = arith.constant 5 : index
    %c0_70 = arith.constant 0 : index
    %c0_71 = arith.constant 0 : index
    %c0_72 = arith.constant 0 : index
    %186 = vector.load %arg10[%c5, %c0_70, %c0_71, %c0_72] : memref<8x8x8x128xf32, #tpu.memory_space<vmem>>, vector<1x8x8x128xf32>
    %187 = vector.shape_cast %186 : vector<1x8x8x128xf32> to vector<8x8x128xf32>
    %188 = vector.shape_cast %185 : vector<8x8x128xf32> to vector<1x8x8x128xf32>
    tpu.vector_store %arg10[%c5, %c0_70, %c0_71, %c0_72], %188 {strides = array<i32>} : memref<8x8x8x128xf32, #tpu.memory_space<vmem>>, vector<1x8x8x128xf32>,
    %189 = vector.shape_cast %180 : vector<1x1xf32> to vector<1x1x1xf32>
    %190 = vector.broadcast %189 : vector<1x1x1xf32> to vector<8x8x4xf32>
    %191 = arith.mulf %190, %64 : vector<8x8x4xf32>
    %192 = vector.broadcast %70 : vector<8x1x4xf32> to vector<8x8x4xf32>
    %193 = arith.subf %191, %192 : vector<8x8x4xf32>
    %c5_73 = arith.constant 5 : index
    %c0_74 = arith.constant 0 : index
    %c0_75 = arith.constant 0 : index
    %c0_76 = arith.constant 0 : index
    %194 = vector.load %arg9[%c5_73, %c0_74, %c0_75, %c0_76] : memref<8x8x8x4xf32, #tpu.memory_space<vmem>>, vector<1x8x8x4xf32>
    %195 = vector.shape_cast %194 : vector<1x8x8x4xf32> to vector<8x8x4xf32>
    %196 = vector.shape_cast %193 : vector<8x8x4xf32> to vector<1x8x8x4xf32>
    tpu.vector_store %arg9[%c5_73, %c0_74, %c0_75, %c0_76], %196 {strides = array<i32>} : memref<8x8x8x4xf32, #tpu.memory_space<vmem>>, vector<1x8x8x4xf32>,
    %197 = vector.extract_strided_slice %48 {offsets = [6, 0], sizes = [1, 1], strides = [1, 1]} : vector<8x1xf32> to vector<1x1xf32>
    %cst_77 = arith.constant 0.949999988 : f32
    %198 = vector.broadcast %cst_77 : f32 to vector<1x1xf32>
    %199 = arith.cmpf ogt, %197, %198 : vector<1x1xf32>
    %200 = arith.extui %199 : vector<1x1xi1> to vector<1x1xi32>
    %201 = arith.sitofp %200 : vector<1x1xi32> to vector<1x1xf32>
    %202 = vector.shape_cast %201 : vector<1x1xf32> to vector<1x1x1xf32>
    %203 = vector.broadcast %202 : vector<1x1x1xf32> to vector<8x8x128xf32>
    %204 = arith.mulf %203, %55 : vector<8x8x128xf32>
    %205 = vector.broadcast %59 : vector<8x1x128xf32> to vector<8x8x128xf32>
    %206 = arith.addf %204, %205 : vector<8x8x128xf32>
    %c6 = arith.constant 6 : index
    %c0_78 = arith.constant 0 : index
    %c0_79 = arith.constant 0 : index
    %c0_80 = arith.constant 0 : index
    %207 = vector.load %arg10[%c6, %c0_78, %c0_79, %c0_80] : memref<8x8x8x128xf32, #tpu.memory_space<vmem>>, vector<1x8x8x128xf32>
    %208 = vector.shape_cast %207 : vector<1x8x8x128xf32> to vector<8x8x128xf32>
    %209 = vector.shape_cast %206 : vector<8x8x128xf32> to vector<1x8x8x128xf32>
    tpu.vector_store %arg10[%c6, %c0_78, %c0_79, %c0_80], %209 {strides = array<i32>} : memref<8x8x8x128xf32, #tpu.memory_space<vmem>>, vector<1x8x8x128xf32>,
    %210 = vector.shape_cast %201 : vector<1x1xf32> to vector<1x1x1xf32>
    %211 = vector.broadcast %210 : vector<1x1x1xf32> to vector<8x8x4xf32>
    %212 = arith.mulf %211, %64 : vector<8x8x4xf32>
    %213 = vector.broadcast %70 : vector<8x1x4xf32> to vector<8x8x4xf32>
    %214 = arith.subf %212, %213 : vector<8x8x4xf32>
    %c6_81 = arith.constant 6 : index
    %c0_82 = arith.constant 0 : index
    %c0_83 = arith.constant 0 : index
    %c0_84 = arith.constant 0 : index
    %215 = vector.load %arg9[%c6_81, %c0_82, %c0_83, %c0_84] : memref<8x8x8x4xf32, #tpu.memory_space<vmem>>, vector<1x8x8x4xf32>
    %216 = vector.shape_cast %215 : vector<1x8x8x4xf32> to vector<8x8x4xf32>
    %217 = vector.shape_cast %214 : vector<8x8x4xf32> to vector<1x8x8x4xf32>
    tpu.vector_store %arg9[%c6_81, %c0_82, %c0_83, %c0_84], %217 {strides = array<i32>} : memref<8x8x8x4xf32, #tpu.memory_space<vmem>>, vector<1x8x8x4xf32>,
    %218 = vector.extract_strided_slice %48 {offsets = [7, 0], sizes = [1, 1], strides = [1, 1]} : vector<8x1xf32> to vector<1x1xf32>
    %cst_85 = arith.constant 0.949999988 : f32
    %219 = vector.broadcast %cst_85 : f32 to vector<1x1xf32>
    %220 = arith.cmpf ogt, %218, %219 : vector<1x1xf32>
    %221 = arith.extui %220 : vector<1x1xi1> to vector<1x1xi32>
    %222 = arith.sitofp %221 : vector<1x1xi32> to vector<1x1xf32>
    %223 = vector.shape_cast %222 : vector<1x1xf32> to vector<1x1x1xf32>
    %224 = vector.broadcast %223 : vector<1x1x1xf32> to vector<8x8x128xf32>
    %225 = arith.mulf %224, %55 : vector<8x8x128xf32>
    %226 = vector.broadcast %59 : vector<8x1x128xf32> to vector<8x8x128xf32>
    %227 = arith.addf %225, %226 : vector<8x8x128xf32>
    %c7 = arith.constant 7 : index
    %c0_86 = arith.constant 0 : index
    %c0_87 = arith.constant 0 : index
    %c0_88 = arith.constant 0 : index
    %228 = vector.load %arg10[%c7, %c0_86, %c0_87, %c0_88] : memref<8x8x8x128xf32, #tpu.memory_space<vmem>>, vector<1x8x8x128xf32>
    %229 = vector.shape_cast %228 : vector<1x8x8x128xf32> to vector<8x8x128xf32>
    %230 = vector.shape_cast %227 : vector<8x8x128xf32> to vector<1x8x8x128xf32>
    tpu.vector_store %arg10[%c7, %c0_86, %c0_87, %c0_88], %230 {strides = array<i32>} : memref<8x8x8x128xf32, #tpu.memory_space<vmem>>, vector<1x8x8x128xf32>,
    %231 = vector.shape_cast %222 : vector<1x1xf32> to vector<1x1x1xf32>
    %232 = vector.broadcast %231 : vector<1x1x1xf32> to vector<8x8x4xf32>
    %233 = arith.mulf %232, %64 : vector<8x8x4xf32>
    %234 = vector.broadcast %70 : vector<8x1x4xf32> to vector<8x8x4xf32>
    %235 = arith.subf %233, %234 : vector<8x8x4xf32>
    %c7_89 = arith.constant 7 : index
    %c0_90 = arith.constant 0 : index
    %c0_91 = arith.constant 0 : index
    %c0_92 = arith.constant 0 : index
    %236 = vector.load %arg9[%c7_89, %c0_90, %c0_91, %c0_92] : memref<8x8x8x4xf32, #tpu.memory_space<vmem>>, vector<1x8x8x4xf32>
    %237 = vector.shape_cast %236 : vector<1x8x8x4xf32> to vector<8x8x4xf32>
    %238 = vector.shape_cast %235 : vector<8x8x4xf32> to vector<1x8x8x4xf32>
    tpu.vector_store %arg9[%c7_89, %c0_90, %c0_91, %c0_92], %238 {strides = array<i32>} : memref<8x8x8x4xf32, #tpu.memory_space<vmem>>, vector<1x8x8x4xf32>,
    return
  }
}

</mosaic_0001>

<bundles_post_ra>
// kernel: targeted_surprise_forward.1
= control target key start
LH: loop header
LB: loop body
LE: loop exit
PB: predicated region body
PF: predicated region fallthrough
CT: control target
= control target key end

     0   :  { %17 = vsyncpa [#allocation4], 0  ;;  %s1329_s13 = smov [#allocation3]   ;;  %s2456_s0 = inlined_call_operand.vmem [shape: f32[8,32], index: 0, kind: input, shape index: {}]   ;;  %s2457_s1 = inlined_call_operand.vmem [shape: f32[4,32], index: 1, kind: input, shape index: {}]   ;;  %s2458_s2 = inlined_call_operand.vmem [shape: f32[1,128], index: 2, kind: input, shape index: {}]   ;;  %s2459_s3 = inlined_call_operand.vmem [shape: f32[1,4], index: 3, kind: input, shape index: {}]   ;;  %s2460_s4 = inlined_call_operand.vmem [shape: f32[4,128], index: 4, kind: input, shape index: {}]   ;;  %s2461_s5 = inlined_call_operand.hbm [shape: f32[32,512], index: 5, kind: input, shape index: {}]   ;;  %s2462_s6 = inlined_call_operand.vmem [shape: f32[1,512], index: 6, kind: input, shape index: {}]   ;;  %s2463_s7 = inlined_call_operand.vmem [shape: f32[1,512], index: 7, kind: input, shape index: {}]   ;;  %s2464_s8 = inlined_call_operand.<no memory space> [shape: f32[1], index: 8, kind: input, shape index: {}]   ;;  %s2465_s9 = inlined_call_operand.vmem [shape: f32[8,8,8,4], index: 9, kind: output, shape index: {0}]   ;;  %s2466_s10 = inlined_call_operand.vmem [shape: f32[8,8,8,128], index: 10, kind: output, shape index: {1}]  }
   0x1   :  { %s33_s14 = sshll.u32 %s1329_s13, 4  ;;  %s34_s14 = int_to_ptr.vmem [resolvable:$true] %s33_s14 }
   0x2   :  { %s1315_s15 = scalar_lea.vmem %s34_s14, 2048  ;;  %p1320_p1 = scmp.lt.s32.totalorder %s34_s14, %s34_s14 }
   0x3   :  { %p1316_p0 = scmp.ne.s32.totalorder %s34_s14, %s1315_s15  ;;  %p1321_p2 = scmp.lt.s32.totalorder %s1315_s15, %s1315_s15 }
   0x5   :  { %p1322_p3 = por %p1321_p2, %p1320_p1 }
   0x7   :  { %p1323_p4 = pnand %p1322_p3, %p1316_p0 }
   0x9   :  { %1326 = shalt.err (!%p1323_p4)
}
   0xa   :  { %s1330_s16 = smov 512   ;;  %s1331_s17 = smov 32  }
   0xb   :  { %39 = dma.hbm_to_vmem [thread:$0]  %s2461_s5, 2048, %s34_s14, [#allocation4], %s1330_s16, %s1330_s16, %s1331_s17  }
   0xc   :  { %1327 = dma.done.wait [#allocation4], 2048  }
   0xd   :  { %1328 = vsyncadd [#allocation4], 4294965248  ;;  %v50_v0 = vld [vmem:[%s2457_s1] sm:$0xf]  ;;  %vm61_vm0 = vcmask 257024   ;;  %vm54_vm1 = vcmask 261120   ;;  %v173_v29 = vlaneseq }
   0xe   :  { %v49_v1 = vld [vmem:[%s2456_s0] sm:$0xff]  ;;  %v60_v2 = vmul.f32 %v50_v0, %v50_v0  ;;  %v1332_v6 = vmov 0.0   ;;  %vm1333_vm2 = vmmov 0   ;;  %v168_v7 = vld [vmem:[#allocation3 + $0x68] sm:$0xff]  ;;  %v170_v19 = vld [vmem:[#allocation3 + $0x78] sm:$0xff]  ;;  %vm143_vm3 = vcmask 31744  }
   0xf   :  { %v53_v3 = vmul.f32 %v49_v1, %v49_v1  ;;  %1279 = vmatprep.subr.mxu0 %v1332_v6  ;;  %260 = vmatprep.mubr.f32.mxu1 %v1332_v6  ;;  %v167_v8 = vld [vmem:[#allocation3 + $0x60] sm:$0xff]  ;;  %v164_v9 = vld [vmem:[#allocation3 + $0x48] sm:$0xff]  ;;  %v169_v22 = vld [vmem:[#allocation3 + $0x70] sm:$0xff]  ;;  %v1412_v30 = vshrl.u32 %v173_v29, 7  ;;  %vm386_vm4 = vcmask 1043456  }
  0x10   :  { %v62_v4 = vsel %vm61_vm0, %v60_v2, 0.0  ;;  %1281 = vmatprep.mubr.msk.f32.mxu0 %vm1333_vm2, %v1332_v6  ;;  %220 = vmatprep.subr.mxu1 %v168_v7  ;;  %v163_v10 = vld [vmem:[#allocation3 + $0x40] sm:$0xff]  ;;  %v160_v11 = vld [vmem:[#allocation3 + $0x28] sm:$0xff]  ;;  %v166_v23 = vld [vmem:[#allocation3 + $0x58] sm:$0xff] }
  0x11   :  { %63 = vadd.xlane.f32.xlu0 %v62_v4  ;;  %v55_v5 = vsel %vm54_vm1, %v53_v3, 0.0  ;;  %221 = vmatpush1.msra.mxu1 %v167_v8  ;;  %v159_v12 = vld [vmem:[#allocation3 + $0x20] sm:$0xff]  ;;  %v156_v13 = vld [vmem:[#allocation3 + $0x8] sm:$0xff]  ;;  %v165_v24 = vld [vmem:[#allocation3 + $0x50] sm:$0xff]  ;;  %v1415_v31 = vsub.s32 0, %v1412_v30  ;;  %v1418_v32 = vsub.s32 1, %v1412_v30 }
  0x12   :  { %222 = vmatprep.subr.mxu1 %v164_v9  ;;  %v155_v14 = vld [vmem:[#allocation3] sm:$0xff]  ;;  %v162_v25 = vld [vmem:[#allocation3 + $0x38] sm:$0xff]  ;;  %v161_v26 = vld [vmem:[#allocation3 + $0x30] sm:$0xff]  ;;  %v1430_v43 = vsub.s32 2, %v1412_v30  ;;  %v1435_v49 = vsub.s32 3, %v1412_v30 }
  0x13   :  { %223 = vmatpush1.msra.mxu1 %v163_v10  ;;  %v158_v27 = vld [vmem:[#allocation3 + $0x18] sm:$0xff]  ;;  %v157_v28 = vld [vmem:[#allocation3 + $0x10] sm:$0xff]  ;;  %v171_v33 = vld [vmem:[%s2462_s6] sm:$0xf]  ;;  %v374_v10 = vstv %s2464_s8 }
  0x14   :  { %224 = vmatprep.subr.mxu1 %v160_v11  ;;  %v176_v35 = vrot.slane %v171_v33, %v1415_v31  ;;  %v180_v36 = vrot.slane %v171_v33, %v1418_v32  ;;  %v342_v39 = vld [vmem:[%s2463_s7] sm:$0xf]  ;;  %v184_v50 = vrot.slane %v171_v33, %v1430_v43  ;;  %v188_v53 = vrot.slane %v171_v33, %v1435_v49 }
  0x15   :  { %56 = vadd.xlane.f32.xlu0 %v55_v5  ;;  %225 = vmatpush1.msra.mxu1 %v159_v12  ;;  %v347_v45 = vrot.slane %v342_v39, %v1415_v31  ;;  %v351_v48 = vrot.slane %v342_v39, %v1418_v32  ;;  %v355_v56 = vrot.slane %v342_v39, %v1430_v43  ;;  %v382_v9 = vld [vmem:[%s2460_s4] sm:$0xf] }
  0x16   :  { %226 = vmatprep.subr.mxu1 %v156_v13  ;;  %v359_v61 = vrot.slane %v342_v39, %v1435_v49  ;;  %v491_v39 = vsub.s32 7, %v1412_v30 }
  0x17   :  { %227 = vmatpush1.msra.mxu1 %v155_v14 }
  0x18   :  { %1156 = vmatmul.mubr.msk.f32.vlgmr.msra.gmra.mxu1 %vm54_vm1, %v49_v1  ;;  %1284 = vmatprep.subr.mxu1 %v1332_v6 }
  0x19   :  { %1286 = vmatprep.mubr.msk.f32.mxu1 %vm1333_vm2, %v1332_v6  ;;  %1285 = vmatpush3.msk.msra.mxu1 %vm386_vm4, %v382_v9 }
  0x9a   :  { %v64_v15 = vpop.xlane.xlu0 %63 }
  0x9b   :  { %1295 = vrsqrt.f32 %v64_v15 }
  0x9e   :  { %v57_v16 = vpop.xlane.xlu0 %56 }
  0x9f   :  { %1297 = vrsqrt.f32 %v57_v16 }
  0xa8   :  { %v1296_v17 = vpop.eup %1295 }
  0xa9   :  { %v66_v18 = vmul.f32 %v1296_v17, %v50_v0 }
  0xab   :  { %1280 = vmatpush3.xpose.msk.msra.mxu0 %vm54_vm1, %v66_v18  ;;  %v1334_v18 = vmov 1966171168  }
  0xac   :  { %v1298_v20 = vpop.eup %1297  ;;  %291 = vmatprep.subr.mxu0 %v170_v19  ;;  %v519_v19 = vunpack.c.l.s4 %v1334_v18 }
  0xad   :  { %v59_v21 = vmul.f32 %v1298_v20, %v49_v1 }
  0xaf   :  { %1282 = vmatmul.mubr.msk.f32.vlgmr.msra.gmra.mxu0 %vm54_vm1, %v59_v21  ;;  %v1161_v21 = vld [vmem:[%s2459_s3] ss:$0 sm:$0xff] }
  0xb0   :  { %292 = vmatpush1.msra.mxu0 %v169_v22  ;;  %331 = vmatprep.mubr.f32.mxu0 %v1332_v6  ;;  %v520_v22 = vunpack.c.0.s8 %v519_v19 }
  0xb1   :  { %293 = vmatprep.subr.mxu0 %v166_v23 }
  0xb2   :  { %294 = vmatpush1.msra.mxu0 %v165_v24  ;;  %v1455_v24 = vsub.s32 %v520_v22, %v1412_v30 }
  0xb3   :  { %295 = vmatprep.subr.mxu0 %v162_v25 }
  0xb4   :  { %296 = vmatpush1.msra.mxu0 %v161_v26 }
  0xb5   :  { %297 = vmatprep.subr.mxu0 %v158_v27 }
  0xb6   :  { %298 = vmatpush1.msra.mxu0 %v157_v28 }
  0xb7   :  { %1157 = vmatmul.mubr.msk.f32.vlgmr.msra.gmra.mxu0 %vm54_vm1, %v49_v1 }
  0xd8   :  { %v262_v34 = vpop.f32.mrf.mxu1 }
  0xd9   :  { %v263_v38 = vadd.f32 %v262_v34, %v176_v35  ;;  %v479_v35 = vsub.s32 4, %v1412_v30 }
  0xda   :  { %v264_v37 = vpop.f32.mrf.mxu1 }
  0xdb   :  { %v265_v40 = vadd.f32 %v264_v37, %v180_v36  ;;  %v338_v46 = vmax.f32 %v263_v38, 0.0  ;;  %v483_v36 = vsub.s32 5, %v1412_v30  ;;  %v487_v37 = vsub.s32 6, %v1412_v30 }
  0xdd   :  { %v339_v47 = vmax.f32 %v265_v40, 0.0  ;;  %v364_v51 = vmul.f32 %v347_v45, %v338_v46 }
  0xdf   :  { %v365_v52 = vmul.f32 %v351_v48, %v339_v47 }
  0xe1   :  { %v368_v58 = vadd.f32 %v365_v52, %v364_v51 }
 0x16f   :  { %v139_v41 = vpop.f32.mrf.mxu0 }
 0x170   :  { %v144_v42 = vsel %vm143_vm3, %v139_v41, -inf }
 0x171   :  { %145 = vmax.xlane.f32.xlu1 %v144_v42  ;;  %v1283_v44 = vpop.f32.mrf.mxu0 }
 0x177   :  { %v333_v54 = vpop.f32.mrf.mxu0 }
 0x178   :  { %v334_v55 = vadd.f32 %v333_v54, %v184_v50 }
 0x179   :  { %v335_v57 = vpop.f32.mrf.mxu0 }
 0x17a   :  { %v340_v59 = vmax.f32 %v334_v55, 0.0  ;;  %v336_v60 = vadd.f32 %v335_v57, %v188_v53 }
 0x17c   :  { %v366_v62 = vmul.f32 %v355_v56, %v340_v59  ;;  %v341_v63 = vmax.f32 %v336_v60, 0.0 }
 0x17e   :  { %v367_v0 = vmul.f32 %v359_v61, %v341_v63  ;;  %v369_v1 = vadd.f32 %v368_v58, %v366_v62 }
 0x180   :  { %v370_v2 = vadd.f32 %v369_v1, %v367_v0 }
 0x182   :  { %371 = vadd.xlane.f32.xlu0 %v370_v2 }
 0x1fa   :  { %v146_v3 = vpop.xlane.xlu1 %145 }
 0x1fb   :  { %v147_v4 = vsub.f32 %v139_v41, %v146_v3 }
 0x1fd   :  { %v148_v5 = vmul.f32 1.442695, %v147_v4 }
 0x1ff   :  { %1299 = vpow2.f32 %v148_v5 }
 0x20b   :  { %v372_v11 = vpop.xlane.xlu0 %371 }
 0x20c   :  { %v1300_v7 = vpop.eup %1299  ;;  %v375_v12 = vadd.f32 %v374_v10, %v372_v11 }
 0x20d   :  { %v150_v8 = vsel %vm143_vm3, %v1300_v7, 0.0 }
 0x20e   :  { %151 = vadd.xlane.f32.xlu1 %v150_v8  ;;  %v376_v13 = vsub.f32 0.0, %v375_v12 }
 0x210   :  { %v377_v14 = vmul.f32 1.442695, %v376_v13 }
 0x212   :  { %1301 = vpow2.f32 %v377_v14 }
 0x21f   :  { %v1302_v15 = vpop.eup %1301 }
 0x220   :  { %v379_v16 = vadd.f32 1.0, %v1302_v15 }
 0x222   :  { %1303 = vrcp.f32 %v379_v16 }
 0x22f   :  { %v1448_v17 = vpop.eup %1303 }
 0x230   :  { %v574_v20 = vsub.f32 1.0, %v1448_v17  ;;  %vm632_vm5 = vcmp.gt.f32.partialorder %v1448_v17, 0.95  ;;  %v1470_v42 = vrot.slane %v1448_v17, %v1415_v31  ;;  %v1475_v45 = vrot.slane %v1448_v17, %v1418_v32 }
 0x231   :  { %v1162_v44 = vsel %vm632_vm5, 1.0, %v1332_v6  ;;  %v1479_v46 = vrot.slane %v1448_v17, %v1430_v43  ;;  %v1483_v30 = vrot.slane %v1448_v17, %v1435_v49  ;;  %v1486_v48 = vrot.slane %v1448_v17, %v479_v35 }
 0x232   :  { %v581_v23 = vmul.f32 %v1161_v21, %v574_v20  ;;  %v1489_v50 = vrot.slane %v1448_v17, %v483_v36  ;;  %v1492_v6 = vrot.slane %v1448_v17, %v487_v37  ;;  %v1495_v52 = vrot.slane %v1448_v17, %v491_v39 }
 0x233   :  { %v1498_v55 = vrot.slane %v1162_v44, %v1415_v31  ;;  %v1501_v56 = vrot.slane %v1162_v44, %v1418_v32  ;;  %v1504_v57 = vrot.slane %v1162_v44, %v1430_v43  ;;  %v1507_v58 = vrot.slane %v1162_v44, %v1435_v49 }
 0x234   :  { %v583_v25 = vcombine.high %v581_v23, %v581_v23  ;;  %v590_v26 = vrot.slane %v581_v23, %v1455_v24  ;;  %v1509_v59 = vrot.slane %v1162_v44, %v479_v35  ;;  %v1520_v32 = vrot.slane %v1162_v44, %v483_v36 }
 0x235   :  { %v1528_v1 = vrot.slane %v1162_v44, %v487_v37  ;;  %v1539_v5 = vrot.slane %v1162_v44, %v491_v39 }
 0x236   :  { %v597_v28 = vrot.slane %v583_v25, %v1455_v24  ;;  %v598_v29 = vcombine.high %v590_v26, %v590_v26  ;;  %v606_v34 = vrot.slane %v590_v26, %v1455_v24 }
 0x238   :  { %v599_v33 = vcombine.high %v597_v28, %v597_v28  ;;  %v620_v38 = vrot.slane %v598_v29, %v1455_v24  ;;  %v613_v40 = vrot.slane %v597_v28, %v1455_v24  ;;  %v628_v47 = vcombine.high %v606_v34, %v606_v34 }
 0x239   :  { %v1512_v61 = vrot.slane %v606_v34, %v1415_v31 }
 0x23a   :  { %v627_v41 = vrot.slane %v599_v33, %v1455_v24  ;;  %v630_v51 = vcombine.high %v620_v38, %v620_v38  ;;  %v629_v53 = vcombine.high %v613_v40, %v613_v40  ;;  %v1515_v62 = vrot.slane %v620_v38, %v1415_v31 }
 0x23b   :  { %v1518_v63 = vrot.slane %v628_v47, %v1415_v31  ;;  %v1526_v49 = vrot.slane %v613_v40, %v1415_v31 }
 0x23c   :  { %v631_v54 = vcombine.high %v627_v41, %v627_v41  ;;  %v1523_v43 = vrot.slane %v630_v51, %v1415_v31  ;;  %v1531_v2 = vrot.slane %v627_v41, %v1415_v31  ;;  %v1534_v3 = vrot.slane %v629_v53, %v1415_v31 }
 0x23e   :  { %v1537_v4 = vrot.slane %v631_v54, %v1415_v31 }
 0x297   :  { %v152_v27 = vpop.xlane.xlu1 %151 }
 0x298   :  { %1305 = vrcp.f32 %v152_v27 }
 0x2a5   :  { %v1306_v60 = vpop.eup %1305 }
 0x2a6   :  { %v154_v0 = vmul.f32 %v1306_v60, %v1300_v7 }
 0x2a8   :  { %1287 = vmatmul.mubr.msk.f32.vlgmr.msra.gmra.mxu1 %vm143_vm3, %v154_v0  ;;  %v1543_v7 = vmul.f32 %v1470_v42, %v154_v0  ;;  %v1546_v8 = vmul.f32 %v1475_v45, %v154_v0  ;;  %v1549_v9 = vmul.f32 %v1479_v46, %v154_v0  ;;  %v1552_v10 = vmul.f32 %v1483_v30, %v154_v0 }
 0x2a9   :  { %v1555_v11 = vmul.f32 %v1486_v48, %v154_v0  ;;  %v1558_v12 = vmul.f32 %v1489_v50, %v154_v0  ;;  %v1561_v13 = vmul.f32 %v1492_v6, %v154_v0  ;;  %v1564_v14 = vmul.f32 %v1495_v52, %v154_v0 }
 0x2aa   :  { %v703_v15 = vmul.f32 %v1498_v55, %v1543_v7  ;;  %v704_v16 = vmul.f32 %v1498_v55, %v1546_v8  ;;  %v705_v18 = vmul.f32 %v1498_v55, %v1549_v9  ;;  %v706_v19 = vmul.f32 %v1498_v55, %v1552_v10 }
 0x2ab   :  { %v707_v20 = vmul.f32 %v1498_v55, %v1555_v11  ;;  %v708_v21 = vmul.f32 %v1498_v55, %v1558_v12  ;;  %v709_v22 = vmul.f32 %v1498_v55, %v1561_v13  ;;  %v710_v23 = vmul.f32 %v1498_v55, %v1564_v14 }
 0x2ac   :  { %v751_v25 = vsub.f32 %v703_v15, %v1512_v61  ;;  %v752_v26 = vsub.f32 %v704_v16, %v1515_v62  ;;  %v753_v27 = vsub.f32 %v705_v18, %v1518_v63  ;;  %v754_v28 = vsub.f32 %v706_v19, %v1523_v43 }
 0x2ad   :  { %v755_v29 = vsub.f32 %v707_v20, %v1526_v49  ;;  %v756_v33 = vsub.f32 %v708_v21, %v1531_v2  ;;  %v757_v34 = vsub.f32 %v709_v22, %v1534_v3  ;;  %v758_v35 = vsub.f32 %v710_v23, %v1537_v4 }
 0x2ae   :  { %759 = vst.msk [vmem:[%s2465_s9] sm:$0xff] %vm143_vm3, %v751_v25  ;;  %760 = vst.msk [vmem:[%s2465_s9 + $0x8] sm:$0xff] %vm143_vm3, %v752_v26  ;;  %v796_v36 = vmul.f32 %v1501_v56, %v1543_v7  ;;  %v797_v37 = vmul.f32 %v1501_v56, %v1546_v8  ;;  %v798_v38 = vmul.f32 %v1501_v56, %v1549_v9 }
 0x2af   :  { %761 = vst.msk [vmem:[%s2465_s9 + $0x10] sm:$0xff] %vm143_vm3, %v753_v27  ;;  %762 = vst.msk [vmem:[%s2465_s9 + $0x18] sm:$0xff] %vm143_vm3, %v754_v28  ;;  %v799_v39 = vmul.f32 %v1501_v56, %v1552_v10  ;;  %v800_v40 = vmul.f32 %v1501_v56, %v1555_v11  ;;  %v801_v41 = vmul.f32 %v1501_v56, %v1558_v12 }
 0x2b0   :  { %763 = vst.msk [vmem:[%s2465_s9 + $0x20] sm:$0xff] %vm143_vm3, %v755_v29  ;;  %764 = vst.msk [vmem:[%s2465_s9 + $0x28] sm:$0xff] %vm143_vm3, %v756_v33  ;;  %v802_v44 = vmul.f32 %v1501_v56, %v1561_v13  ;;  %v803_v47 = vmul.f32 %v1501_v56, %v1564_v14  ;;  %v804_v51 = vsub.f32 %v796_v36, %v1512_v61 }
 0x2b1   :  { %765 = vst.msk [vmem:[%s2465_s9 + $0x30] sm:$0xff] %vm143_vm3, %v757_v34  ;;  %766 = vst.msk [vmem:[%s2465_s9 + $0x38] sm:$0xff] %vm143_vm3, %v758_v35  ;;  %v805_v53 = vsub.f32 %v797_v37, %v1515_v62  ;;  %v806_v54 = vsub.f32 %v798_v38, %v1518_v63  ;;  %v807_v60 = vsub.f32 %v799_v39, %v1523_v43 }
 0x2b2   :  { %v808_v0 = vsub.f32 %v800_v40, %v1526_v49  ;;  %v809_v15 = vsub.f32 %v801_v41, %v1531_v2  ;;  %v810_v16 = vsub.f32 %v802_v44, %v1534_v3  ;;  %v811_v18 = vsub.f32 %v803_v47, %v1537_v4  ;;  %1171 = vst.msk [vmem:[%s2465_s9 + $0x40] sm:$0xff] %vm143_vm3, %v804_v51 }
 0x2b3   :  { %1172 = vst.msk [vmem:[%s2465_s9 + $0x48] sm:$0xff] %vm143_vm3, %v805_v53  ;;  %1173 = vst.msk [vmem:[%s2465_s9 + $0x50] sm:$0xff] %vm143_vm3, %v806_v54  ;;  %v850_v19 = vmul.f32 %v1504_v57, %v1543_v7  ;;  %v851_v20 = vmul.f32 %v1504_v57, %v1546_v8  ;;  %v852_v21 = vmul.f32 %v1504_v57, %v1549_v9 }
 0x2b4   :  { %1174 = vst.msk [vmem:[%s2465_s9 + $0x58] sm:$0xff] %vm143_vm3, %v807_v60  ;;  %v853_v22 = vmul.f32 %v1504_v57, %v1552_v10  ;;  %1175 = vst.msk [vmem:[%s2465_s9 + $0x60] sm:$0xff] %vm143_vm3, %v808_v0  ;;  %v854_v23 = vmul.f32 %v1504_v57, %v1555_v11  ;;  %v855_v25 = vmul.f32 %v1504_v57, %v1558_v12 }
 0x2b5   :  { %1176 = vst.msk [vmem:[%s2465_s9 + $0x68] sm:$0xff] %vm143_vm3, %v809_v15  ;;  %1177 = vst.msk [vmem:[%s2465_s9 + $0x70] sm:$0xff] %vm143_vm3, %v810_v16  ;;  %v856_v26 = vmul.f32 %v1504_v57, %v1561_v13  ;;  %v857_v27 = vmul.f32 %v1504_v57, %v1564_v14  ;;  %v858_v28 = vsub.f32 %v850_v19, %v1512_v61 }
 0x2b6   :  { %1178 = vst.msk [vmem:[%s2465_s9 + $0x78] sm:$0xff] %vm143_vm3, %v811_v18  ;;  %v859_v29 = vsub.f32 %v851_v20, %v1515_v62  ;;  %v860_v33 = vsub.f32 %v852_v21, %v1518_v63  ;;  %v861_v34 = vsub.f32 %v853_v22, %v1523_v43  ;;  %v862_v35 = vsub.f32 %v854_v23, %v1526_v49 }
 0x2b7   :  { %v863_v36 = vsub.f32 %v855_v25, %v1531_v2  ;;  %v864_v37 = vsub.f32 %v856_v26, %v1534_v3  ;;  %v865_v38 = vsub.f32 %v857_v27, %v1537_v4  ;;  %1187 = vst.msk [vmem:[%s2465_s9 + $0x80] sm:$0xff] %vm143_vm3, %v858_v28  ;;  %v904_v39 = vmul.f32 %v1507_v58, %v1543_v7 }
 0x2b8   :  { %1188 = vst.msk [vmem:[%s2465_s9 + $0x88] sm:$0xff] %vm143_vm3, %v859_v29  ;;  %1189 = vst.msk [vmem:[%s2465_s9 + $0x90] sm:$0xff] %vm143_vm3, %v860_v33  ;;  %v905_v40 = vmul.f32 %v1507_v58, %v1546_v8  ;;  %v906_v41 = vmul.f32 %v1507_v58, %v1549_v9  ;;  %v907_v44 = vmul.f32 %v1507_v58, %v1552_v10 }
 0x2b9   :  { %1190 = vst.msk [vmem:[%s2465_s9 + $0x98] sm:$0xff] %vm143_vm3, %v861_v34  ;;  %1191 = vst.msk [vmem:[%s2465_s9 + $0xa0] sm:$0xff] %vm143_vm3, %v862_v35  ;;  %v908_v47 = vmul.f32 %v1507_v58, %v1555_v11  ;;  %v909_v51 = vmul.f32 %v1507_v58, %v1558_v12  ;;  %v910_v53 = vmul.f32 %v1507_v58, %v1561_v13 }
 0x2ba   :  { %1192 = vst.msk [vmem:[%s2465_s9 + $0xa8] sm:$0xff] %vm143_vm3, %v863_v36  ;;  %1193 = vst.msk [vmem:[%s2465_s9 + $0xb0] sm:$0xff] %vm143_vm3, %v864_v37  ;;  %v911_v54 = vmul.f32 %v1507_v58, %v1564_v14  ;;  %v912_v60 = vsub.f32 %v904_v39, %v1512_v61  ;;  %v913_v0 = vsub.f32 %v905_v40, %v1515_v62 }
 0x2bb   :  { %1194 = vst.msk [vmem:[%s2465_s9 + $0xb8] sm:$0xff] %vm143_vm3, %v865_v38  ;;  %v914_v15 = vsub.f32 %v906_v41, %v1518_v63  ;;  %v915_v16 = vsub.f32 %v907_v44, %v1523_v43  ;;  %v916_v18 = vsub.f32 %v908_v47, %v1526_v49  ;;  %v917_v19 = vsub.f32 %v909_v51, %v1531_v2 }
 0x2bc   :  { %v918_v20 = vsub.f32 %v910_v53, %v1534_v3  ;;  %v919_v21 = vsub.f32 %v911_v54, %v1537_v4  ;;  %1203 = vst.msk [vmem:[%s2465_s9 + $0xc0] sm:$0xff] %vm143_vm3, %v912_v60  ;;  %1204 = vst.msk [vmem:[%s2465_s9 + $0xc8] sm:$0xff] %vm143_vm3, %v913_v0  ;;  %v958_v22 = vmul.f32 %v1509_v59, %v1543_v7 }
 0x2bd   :  { %1205 = vst.msk [vmem:[%s2465_s9 + $0xd0] sm:$0xff] %vm143_vm3, %v914_v15  ;;  %1206 = vst.msk [vmem:[%s2465_s9 + $0xd8] sm:$0xff] %vm143_vm3, %v915_v16  ;;  %v959_v23 = vmul.f32 %v1509_v59, %v1546_v8  ;;  %v960_v25 = vmul.f32 %v1509_v59, %v1549_v9  ;;  %v961_v26 = vmul.f32 %v1509_v59, %v1552_v10 }
 0x2be   :  { %1207 = vst.msk [vmem:[%s2465_s9 + $0xe0] sm:$0xff] %vm143_vm3, %v916_v18  ;;  %1208 = vst.msk [vmem:[%s2465_s9 + $0xe8] sm:$0xff] %vm143_vm3, %v917_v19  ;;  %v962_v27 = vmul.f32 %v1509_v59, %v1555_v11  ;;  %v963_v28 = vmul.f32 %v1509_v59, %v1558_v12  ;;  %v964_v29 = vmul.f32 %v1509_v59, %v1561_v13 }
 0x2bf   :  { %1209 = vst.msk [vmem:[%s2465_s9 + $0xf0] sm:$0xff] %vm143_vm3, %v918_v20  ;;  %1210 = vst.msk [vmem:[%s2465_s9 + $0xf8] sm:$0xff] %vm143_vm3, %v919_v21  ;;  %v965_v33 = vmul.f32 %v1509_v59, %v1564_v14  ;;  %v966_v34 = vsub.f32 %v958_v22, %v1512_v61  ;;  %v967_v35 = vsub.f32 %v959_v23, %v1515_v62 }
 0x2c0   :  { %v968_v36 = vsub.f32 %v960_v25, %v1518_v63  ;;  %v969_v37 = vsub.f32 %v961_v26, %v1523_v43  ;;  %v970_v38 = vsub.f32 %v962_v27, %v1526_v49  ;;  %v971_v39 = vsub.f32 %v963_v28, %v1531_v2 }
 0x2c1   :  { %v972_v40 = vsub.f32 %v964_v29, %v1534_v3  ;;  %v973_v41 = vsub.f32 %v965_v33, %v1537_v4  ;;  %1219 = vst.msk [vmem:[%s2465_s9 + $0x100] sm:$0xff] %vm143_vm3, %v966_v34  ;;  %1220 = vst.msk [vmem:[%s2465_s9 + $0x108] sm:$0xff] %vm143_vm3, %v967_v35  ;;  %v1012_v44 = vmul.f32 %v1520_v32, %v1543_v7 }
 0x2c2   :  { %1221 = vst.msk [vmem:[%s2465_s9 + $0x110] sm:$0xff] %vm143_vm3, %v968_v36  ;;  %1222 = vst.msk [vmem:[%s2465_s9 + $0x118] sm:$0xff] %vm143_vm3, %v969_v37  ;;  %v1013_v47 = vmul.f32 %v1520_v32, %v1546_v8  ;;  %v1014_v51 = vmul.f32 %v1520_v32, %v1549_v9  ;;  %v1015_v53 = vmul.f32 %v1520_v32, %v1552_v10 }
 0x2c3   :  { %1223 = vst.msk [vmem:[%s2465_s9 + $0x120] sm:$0xff] %vm143_vm3, %v970_v38  ;;  %1224 = vst.msk [vmem:[%s2465_s9 + $0x128] sm:$0xff] %vm143_vm3, %v971_v39  ;;  %v1016_v54 = vmul.f32 %v1520_v32, %v1555_v11  ;;  %v1017_v60 = vmul.f32 %v1520_v32, %v1558_v12  ;;  %v1018_v0 = vmul.f32 %v1520_v32, %v1561_v13 }
 0x2c4   :  { %1225 = vst.msk [vmem:[%s2465_s9 + $0x130] sm:$0xff] %vm143_vm3, %v972_v40  ;;  %1226 = vst.msk [vmem:[%s2465_s9 + $0x138] sm:$0xff] %vm143_vm3, %v973_v41  ;;  %v1019_v15 = vmul.f32 %v1520_v32, %v1564_v14  ;;  %v1020_v16 = vsub.f32 %v1012_v44, %v1512_v61  ;;  %v1021_v18 = vsub.f32 %v1013_v47, %v1515_v62 }
 0x2c5   :  { %v1022_v19 = vsub.f32 %v1014_v51, %v1518_v63  ;;  %v1023_v20 = vsub.f32 %v1015_v53, %v1523_v43  ;;  %v1024_v21 = vsub.f32 %v1016_v54, %v1526_v49  ;;  %v1025_v22 = vsub.f32 %v1017_v60, %v1531_v2 }
 0x2c6   :  { %v1026_v23 = vsub.f32 %v1018_v0, %v1534_v3  ;;  %v1027_v25 = vsub.f32 %v1019_v15, %v1537_v4  ;;  %1235 = vst.msk [vmem:[%s2465_s9 + $0x140] sm:$0xff] %vm143_vm3, %v1020_v16  ;;  %1236 = vst.msk [vmem:[%s2465_s9 + $0x148] sm:$0xff] %vm143_vm3, %v1021_v18  ;;  %v1066_v26 = vmul.f32 %v1528_v1, %v1543_v7 }
 0x2c7   :  { %1237 = vst.msk [vmem:[%s2465_s9 + $0x150] sm:$0xff] %vm143_vm3, %v1022_v19  ;;  %1238 = vst.msk [vmem:[%s2465_s9 + $0x158] sm:$0xff] %vm143_vm3, %v1023_v20  ;;  %v1067_v27 = vmul.f32 %v1528_v1, %v1546_v8  ;;  %v1068_v28 = vmul.f32 %v1528_v1, %v1549_v9  ;;  %v1069_v29 = vmul.f32 %v1528_v1, %v1552_v10 }
 0x2c8   :  { %1239 = vst.msk [vmem:[%s2465_s9 + $0x160] sm:$0xff] %vm143_vm3, %v1024_v21  ;;  %1240 = vst.msk [vmem:[%s2465_s9 + $0x168] sm:$0xff] %vm143_vm3, %v1025_v22  ;;  %v1070_v33 = vmul.f32 %v1528_v1, %v1555_v11  ;;  %v1071_v34 = vmul.f32 %v1528_v1, %v1558_v12  ;;  %v1072_v35 = vmul.f32 %v1528_v1, %v1561_v13 }
 0x2c9   :  { %1241 = vst.msk [vmem:[%s2465_s9 + $0x170] sm:$0xff] %vm143_vm3, %v1026_v23  ;;  %1242 = vst.msk [vmem:[%s2465_s9 + $0x178] sm:$0xff] %vm143_vm3, %v1027_v25  ;;  %v1073_v36 = vmul.f32 %v1528_v1, %v1564_v14  ;;  %v1074_v37 = vsub.f32 %v1066_v26, %v1512_v61  ;;  %v1075_v38 = vsub.f32 %v1067_v27, %v1515_v62 }
 0x2ca   :  { %v1076_v39 = vsub.f32 %v1068_v28, %v1518_v63  ;;  %v1077_v40 = vsub.f32 %v1069_v29, %v1523_v43  ;;  %v1078_v41 = vsub.f32 %v1070_v33, %v1526_v49  ;;  %v1079_v44 = vsub.f32 %v1071_v34, %v1531_v2 }
 0x2cb   :  { %v1080_v47 = vsub.f32 %v1072_v35, %v1534_v3  ;;  %v1081_v51 = vsub.f32 %v1073_v36, %v1537_v4  ;;  %1251 = vst.msk [vmem:[%s2465_s9 + $0x180] sm:$0xff] %vm143_vm3, %v1074_v37  ;;  %1252 = vst.msk [vmem:[%s2465_s9 + $0x188] sm:$0xff] %vm143_vm3, %v1075_v38  ;;  %v1120_v53 = vmul.f32 %v1539_v5, %v1543_v7 }
 0x2cc   :  { %1253 = vst.msk [vmem:[%s2465_s9 + $0x190] sm:$0xff] %vm143_vm3, %v1076_v39  ;;  %1254 = vst.msk [vmem:[%s2465_s9 + $0x198] sm:$0xff] %vm143_vm3, %v1077_v40  ;;  %v1121_v54 = vmul.f32 %v1539_v5, %v1546_v8  ;;  %v1122_v60 = vmul.f32 %v1539_v5, %v1549_v9  ;;  %v1123_v0 = vmul.f32 %v1539_v5, %v1552_v10 }
 0x2cd   :  { %1255 = vst.msk [vmem:[%s2465_s9 + $0x1a0] sm:$0xff] %vm143_vm3, %v1078_v41  ;;  %1256 = vst.msk [vmem:[%s2465_s9 + $0x1a8] sm:$0xff] %vm143_vm3, %v1079_v44  ;;  %v1124_v7 = vmul.f32 %v1539_v5, %v1555_v11  ;;  %v1125_v8 = vmul.f32 %v1539_v5, %v1558_v12  ;;  %v1126_v9 = vmul.f32 %v1539_v5, %v1561_v13 }
 0x2ce   :  { %1257 = vst.msk [vmem:[%s2465_s9 + $0x1b0] sm:$0xff] %vm143_vm3, %v1080_v47  ;;  %1258 = vst.msk [vmem:[%s2465_s9 + $0x1b8] sm:$0xff] %vm143_vm3, %v1081_v51  ;;  %v1127_v10 = vmul.f32 %v1539_v5, %v1564_v14  ;;  %v1128_v15 = vsub.f32 %v1120_v53, %v1512_v61  ;;  %v1129_v16 = vsub.f32 %v1121_v54, %v1515_v62  ;;  %v1160_v61 = vld [vmem:[%s2458_s2] ss:$0 sm:$0xff] }
 0x2cf   :  { %v1130_v18 = vsub.f32 %v1122_v60, %v1518_v63  ;;  %v1131_v19 = vsub.f32 %v1123_v0, %v1523_v43  ;;  %v1132_v20 = vsub.f32 %v1124_v7, %v1526_v49  ;;  %v1133_v11 = vsub.f32 %v1125_v8, %v1531_v2 }
 0x2d0   :  { %v1134_v12 = vsub.f32 %v1126_v9, %v1534_v3  ;;  %v1135_v21 = vsub.f32 %v1127_v10, %v1537_v4  ;;  %1267 = vst.msk [vmem:[%s2465_s9 + $0x1c0] sm:$0xff] %vm143_vm3, %v1128_v15  ;;  %1268 = vst.msk [vmem:[%s2465_s9 + $0x1c8] sm:$0xff] %vm143_vm3, %v1129_v16  ;;  %v515_v62 = vmul.f32 %v1448_v17, %v1160_v61 }
 0x2d1   :  { %1269 = vst.msk [vmem:[%s2465_s9 + $0x1d0] sm:$0xff] %vm143_vm3, %v1130_v18  ;;  %1270 = vst.msk [vmem:[%s2465_s9 + $0x1d8] sm:$0xff] %vm143_vm3, %v1131_v19 }
 0x2d2   :  { %1271 = vst.msk [vmem:[%s2465_s9 + $0x1e0] sm:$0xff] %vm143_vm3, %v1132_v20  ;;  %1272 = vst.msk [vmem:[%s2465_s9 + $0x1e8] sm:$0xff] %vm143_vm3, %v1133_v11  ;;  %v517_v63 = vcombine.high %v515_v62, %v515_v62  ;;  %v524_v43 = vrot.slane %v515_v62, %v1455_v24 }
 0x2d3   :  { %1273 = vst.msk [vmem:[%s2465_s9 + $0x1f0] sm:$0xff] %vm143_vm3, %v1134_v12  ;;  %1274 = vst.msk [vmem:[%s2465_s9 + $0x1f8] sm:$0xff] %vm143_vm3, %v1135_v21 }
 0x2d4   :  { %v531_v49 = vrot.slane %v517_v63, %v1455_v24  ;;  %v532_v2 = vcombine.high %v524_v43, %v524_v43  ;;  %v540_v4 = vrot.slane %v524_v43, %v1455_v24 }
 0x2d6   :  { %v533_v3 = vcombine.high %v531_v49, %v531_v49  ;;  %v547_v13 = vrot.slane %v531_v49, %v1455_v24  ;;  %v554_v14 = vrot.slane %v532_v2, %v1455_v24  ;;  %v562_v23 = vcombine.high %v540_v4, %v540_v4 }
 0x2d7   :  { %v2025_v17 = vrot.slane %v540_v4, %v1415_v31 }
 0x2d8   :  { %v561_v22 = vrot.slane %v533_v3, %v1455_v24  ;;  %v563_v25 = vcombine.high %v547_v13, %v547_v13  ;;  %v564_v26 = vcombine.high %v554_v14, %v554_v14  ;;  %v2028_v28 = vrot.slane %v554_v14, %v1415_v31 }
 0x2d9   :  { %v2031_v29 = vrot.slane %v562_v23, %v1415_v31  ;;  %v2034_v33 = vrot.slane %v547_v13, %v1415_v31 }
 0x2da   :  { %v565_v27 = vcombine.high %v561_v22, %v561_v22  ;;  %v2037_v35 = vrot.slane %v564_v26, %v1415_v31  ;;  %v2040_v24 = vrot.slane %v561_v22, %v1415_v31  ;;  %v2043_v36 = vrot.slane %v563_v25, %v1415_v31 }
 0x2dc   :  { %v2046_v37 = vrot.slane %v565_v27, %v1415_v31 }
 0x368   :  { %v456_v34 = vpop.f32.mrf.mxu1 }
 0x369   :  { %v2049_v38 = vmul.f32 %v1470_v42, %v456_v34  ;;  %v2052_v39 = vmul.f32 %v1475_v45, %v456_v34  ;;  %v2055_v40 = vmul.f32 %v1479_v46, %v456_v34  ;;  %v2058_v41 = vmul.f32 %v1483_v30, %v456_v34 }
 0x36a   :  { %v2061_v44 = vmul.f32 %v1486_v48, %v456_v34  ;;  %v2064_v47 = vmul.f32 %v1489_v50, %v456_v34  ;;  %v2067_v31 = vmul.f32 %v1492_v6, %v456_v34  ;;  %v2070_v42 = vmul.f32 %v1495_v52, %v456_v34  ;;  %v1288_v45 = vpop.f32.mrf.mxu1 }
 0x36b   :  { %v639_v46 = vmul.f32 %v1498_v55, %v2049_v38  ;;  %v640_v30 = vmul.f32 %v1498_v55, %v2052_v39  ;;  %v641_v48 = vmul.f32 %v1498_v55, %v2055_v40  ;;  %v642_v50 = vmul.f32 %v1498_v55, %v2058_v41 }
 0x36c   :  { %v643_v6 = vmul.f32 %v1498_v55, %v2061_v44  ;;  %v644_v52 = vmul.f32 %v1498_v55, %v2064_v47  ;;  %v645_v51 = vmul.f32 %v1498_v55, %v2067_v31  ;;  %v646_v53 = vmul.f32 %v1498_v55, %v2070_v42 }
 0x36d   :  { %v687_v54 = vadd.f32 %v2025_v17, %v639_v46  ;;  %v688_v60 = vadd.f32 %v2028_v28, %v640_v30  ;;  %v689_v0 = vadd.f32 %v2031_v29, %v641_v48  ;;  %v690_v7 = vadd.f32 %v2037_v35, %v642_v50 }
 0x36e   :  { %v691_v8 = vadd.f32 %v2034_v33, %v643_v6  ;;  %v692_v9 = vadd.f32 %v2040_v24, %v644_v52  ;;  %v693_v10 = vadd.f32 %v2043_v36, %v645_v51  ;;  %v694_v15 = vadd.f32 %v2046_v37, %v646_v53 }
 0x36f   :  { %695 = vst [vmem:[%s2466_s10] sm:$0xff] %v687_v54  ;;  %696 = vst [vmem:[%s2466_s10 + $0x8] sm:$0xff] %v688_v60  ;;  %v771_v55 = vmul.f32 %v1501_v56, %v2049_v38  ;;  %v772_v16 = vmul.f32 %v1501_v56, %v2052_v39  ;;  %v773_v18 = vmul.f32 %v1501_v56, %v2055_v40 }
 0x370   :  { %697 = vst [vmem:[%s2466_s10 + $0x10] sm:$0xff] %v689_v0  ;;  %698 = vst [vmem:[%s2466_s10 + $0x18] sm:$0xff] %v690_v7  ;;  %v774_v19 = vmul.f32 %v1501_v56, %v2058_v41  ;;  %v775_v20 = vmul.f32 %v1501_v56, %v2061_v44  ;;  %v776_v11 = vmul.f32 %v1501_v56, %v2064_v47 }
 0x371   :  { %699 = vst [vmem:[%s2466_s10 + $0x20] sm:$0xff] %v691_v8  ;;  %700 = vst [vmem:[%s2466_s10 + $0x28] sm:$0xff] %v692_v9  ;;  %v777_v12 = vmul.f32 %v1501_v56, %v2067_v31  ;;  %v778_v21 = vmul.f32 %v1501_v56, %v2070_v42  ;;  %v779_v61 = vadd.f32 %v771_v55, %v2025_v17 }
 0x372   :  { %701 = vst [vmem:[%s2466_s10 + $0x30] sm:$0xff] %v693_v10  ;;  %702 = vst [vmem:[%s2466_s10 + $0x38] sm:$0xff] %v694_v15  ;;  %v780_v62 = vadd.f32 %v772_v16, %v2028_v28  ;;  %v781_v63 = vadd.f32 %v773_v18, %v2031_v29  ;;  %v782_v43 = vadd.f32 %v774_v19, %v2037_v35 }
 0x373   :  { %v783_v49 = vadd.f32 %v775_v20, %v2034_v33  ;;  %v784_v2 = vadd.f32 %v776_v11, %v2040_v24  ;;  %v785_v3 = vadd.f32 %v777_v12, %v2043_v36  ;;  %v786_v4 = vadd.f32 %v778_v21, %v2046_v37  ;;  %1163 = vst [vmem:[%s2466_s10 + $0x40] sm:$0xff] %v779_v61 }
 0x374   :  { %1164 = vst [vmem:[%s2466_s10 + $0x48] sm:$0xff] %v780_v62  ;;  %1165 = vst [vmem:[%s2466_s10 + $0x50] sm:$0xff] %v781_v63  ;;  %v825_v56 = vmul.f32 %v1504_v57, %v2049_v38  ;;  %v826_v13 = vmul.f32 %v1504_v57, %v2052_v39  ;;  %v827_v14 = vmul.f32 %v1504_v57, %v2055_v40 }
 0x375   :  { %1166 = vst [vmem:[%s2466_s10 + $0x58] sm:$0xff] %v782_v43  ;;  %v828_v22 = vmul.f32 %v1504_v57, %v2058_v41  ;;  %1167 = vst [vmem:[%s2466_s10 + $0x60] sm:$0xff] %v783_v49  ;;  %v829_v23 = vmul.f32 %v1504_v57, %v2061_v44  ;;  %v830_v25 = vmul.f32 %v1504_v57, %v2064_v47 }
 0x376   :  { %1168 = vst [vmem:[%s2466_s10 + $0x68] sm:$0xff] %v784_v2  ;;  %1169 = vst [vmem:[%s2466_s10 + $0x70] sm:$0xff] %v785_v3  ;;  %v831_v26 = vmul.f32 %v1504_v57, %v2067_v31  ;;  %v832_v27 = vmul.f32 %v1504_v57, %v2070_v42  ;;  %v833_v34 = vadd.f32 %v825_v56, %v2025_v17 }
 0x377   :  { %1170 = vst [vmem:[%s2466_s10 + $0x78] sm:$0xff] %v786_v4  ;;  %v834_v45 = vadd.f32 %v826_v13, %v2028_v28  ;;  %v835_v46 = vadd.f32 %v827_v14, %v2031_v29  ;;  %v836_v30 = vadd.f32 %v828_v22, %v2037_v35  ;;  %v837_v48 = vadd.f32 %v829_v23, %v2034_v33 }
 0x378   :  { %v838_v50 = vadd.f32 %v830_v25, %v2040_v24  ;;  %v839_v6 = vadd.f32 %v831_v26, %v2043_v36  ;;  %v840_v52 = vadd.f32 %v832_v27, %v2046_v37  ;;  %1179 = vst [vmem:[%s2466_s10 + $0x80] sm:$0xff] %v833_v34  ;;  %v879_v57 = vmul.f32 %v1507_v58, %v2049_v38 }
 0x379   :  { %1180 = vst [vmem:[%s2466_s10 + $0x88] sm:$0xff] %v834_v45  ;;  %1181 = vst [vmem:[%s2466_s10 + $0x90] sm:$0xff] %v835_v46  ;;  %v880_v51 = vmul.f32 %v1507_v58, %v2052_v39  ;;  %v881_v53 = vmul.f32 %v1507_v58, %v2055_v40  ;;  %v882_v54 = vmul.f32 %v1507_v58, %v2058_v41 }
 0x37a   :  { %1182 = vst [vmem:[%s2466_s10 + $0x98] sm:$0xff] %v836_v30  ;;  %1183 = vst [vmem:[%s2466_s10 + $0xa0] sm:$0xff] %v837_v48  ;;  %v883_v60 = vmul.f32 %v1507_v58, %v2061_v44  ;;  %v884_v0 = vmul.f32 %v1507_v58, %v2064_v47  ;;  %v885_v7 = vmul.f32 %v1507_v58, %v2067_v31 }
 0x37b   :  { %1184 = vst [vmem:[%s2466_s10 + $0xa8] sm:$0xff] %v838_v50  ;;  %1185 = vst [vmem:[%s2466_s10 + $0xb0] sm:$0xff] %v839_v6  ;;  %v886_v8 = vmul.f32 %v1507_v58, %v2070_v42  ;;  %v887_v9 = vadd.f32 %v879_v57, %v2025_v17  ;;  %v888_v10 = vadd.f32 %v880_v51, %v2028_v28 }
 0x37c   :  { %1186 = vst [vmem:[%s2466_s10 + $0xb8] sm:$0xff] %v840_v52  ;;  %v889_v15 = vadd.f32 %v881_v53, %v2031_v29  ;;  %v890_v55 = vadd.f32 %v882_v54, %v2037_v35  ;;  %v891_v16 = vadd.f32 %v883_v60, %v2034_v33  ;;  %v892_v18 = vadd.f32 %v884_v0, %v2040_v24 }
 0x37d   :  { %v893_v19 = vadd.f32 %v885_v7, %v2043_v36  ;;  %v894_v20 = vadd.f32 %v886_v8, %v2046_v37  ;;  %1195 = vst [vmem:[%s2466_s10 + $0xc0] sm:$0xff] %v887_v9  ;;  %1196 = vst [vmem:[%s2466_s10 + $0xc8] sm:$0xff] %v888_v10  ;;  %v933_v58 = vmul.f32 %v1509_v59, %v2049_v38 }
 0x37e   :  { %1197 = vst [vmem:[%s2466_s10 + $0xd0] sm:$0xff] %v889_v15  ;;  %1198 = vst [vmem:[%s2466_s10 + $0xd8] sm:$0xff] %v890_v55  ;;  %v934_v11 = vmul.f32 %v1509_v59, %v2052_v39  ;;  %v935_v12 = vmul.f32 %v1509_v59, %v2055_v40  ;;  %v936_v21 = vmul.f32 %v1509_v59, %v2058_v41 }
 0x37f   :  { %1199 = vst [vmem:[%s2466_s10 + $0xe0] sm:$0xff] %v891_v16  ;;  %1200 = vst [vmem:[%s2466_s10 + $0xe8] sm:$0xff] %v892_v18  ;;  %v937_v61 = vmul.f32 %v1509_v59, %v2061_v44  ;;  %v938_v62 = vmul.f32 %v1509_v59, %v2064_v47  ;;  %v939_v63 = vmul.f32 %v1509_v59, %v2067_v31 }
 0x380   :  { %1201 = vst [vmem:[%s2466_s10 + $0xf0] sm:$0xff] %v893_v19  ;;  %1202 = vst [vmem:[%s2466_s10 + $0xf8] sm:$0xff] %v894_v20  ;;  %v940_v43 = vmul.f32 %v1509_v59, %v2070_v42  ;;  %v941_v49 = vadd.f32 %v933_v58, %v2025_v17  ;;  %v942_v2 = vadd.f32 %v934_v11, %v2028_v28 }
 0x381   :  { %v943_v3 = vadd.f32 %v935_v12, %v2031_v29  ;;  %v944_v4 = vadd.f32 %v936_v21, %v2037_v35  ;;  %v945_v56 = vadd.f32 %v937_v61, %v2034_v33  ;;  %v946_v13 = vadd.f32 %v938_v62, %v2040_v24 }
 0x382   :  { %v947_v14 = vadd.f32 %v939_v63, %v2043_v36  ;;  %v948_v22 = vadd.f32 %v940_v43, %v2046_v37  ;;  %1211 = vst [vmem:[%s2466_s10 + $0x100] sm:$0xff] %v941_v49  ;;  %1212 = vst [vmem:[%s2466_s10 + $0x108] sm:$0xff] %v942_v2  ;;  %v987_v59 = vmul.f32 %v1520_v32, %v2049_v38 }
 0x383   :  { %1213 = vst [vmem:[%s2466_s10 + $0x110] sm:$0xff] %v943_v3  ;;  %1214 = vst [vmem:[%s2466_s10 + $0x118] sm:$0xff] %v944_v4  ;;  %v988_v23 = vmul.f32 %v1520_v32, %v2052_v39  ;;  %v989_v25 = vmul.f32 %v1520_v32, %v2055_v40  ;;  %v990_v26 = vmul.f32 %v1520_v32, %v2058_v41 }
 0x384   :  { %1215 = vst [vmem:[%s2466_s10 + $0x120] sm:$0xff] %v945_v56  ;;  %1216 = vst [vmem:[%s2466_s10 + $0x128] sm:$0xff] %v946_v13  ;;  %v991_v27 = vmul.f32 %v1520_v32, %v2061_v44  ;;  %v992_v34 = vmul.f32 %v1520_v32, %v2064_v47  ;;  %v993_v45 = vmul.f32 %v1520_v32, %v2067_v31 }
 0x385   :  { %1217 = vst [vmem:[%s2466_s10 + $0x130] sm:$0xff] %v947_v14  ;;  %1218 = vst [vmem:[%s2466_s10 + $0x138] sm:$0xff] %v948_v22  ;;  %v994_v46 = vmul.f32 %v1520_v32, %v2070_v42  ;;  %v995_v30 = vadd.f32 %v987_v59, %v2025_v17  ;;  %v996_v48 = vadd.f32 %v988_v23, %v2028_v28 }
 0x386   :  { %v997_v50 = vadd.f32 %v989_v25, %v2031_v29  ;;  %v998_v6 = vadd.f32 %v990_v26, %v2037_v35  ;;  %v999_v52 = vadd.f32 %v991_v27, %v2034_v33  ;;  %v1000_v57 = vadd.f32 %v992_v34, %v2040_v24 }
 0x387   :  { %v1001_v51 = vadd.f32 %v993_v45, %v2043_v36  ;;  %v1002_v53 = vadd.f32 %v994_v46, %v2046_v37  ;;  %1227 = vst [vmem:[%s2466_s10 + $0x140] sm:$0xff] %v995_v30  ;;  %1228 = vst [vmem:[%s2466_s10 + $0x148] sm:$0xff] %v996_v48  ;;  %v1041_v32 = vmul.f32 %v1528_v1, %v2049_v38 }
 0x388   :  { %1229 = vst [vmem:[%s2466_s10 + $0x150] sm:$0xff] %v997_v50  ;;  %1230 = vst [vmem:[%s2466_s10 + $0x158] sm:$0xff] %v998_v6  ;;  %v1042_v54 = vmul.f32 %v1528_v1, %v2052_v39  ;;  %v1043_v60 = vmul.f32 %v1528_v1, %v2055_v40  ;;  %v1044_v0 = vmul.f32 %v1528_v1, %v2058_v41 }
 0x389   :  { %1231 = vst [vmem:[%s2466_s10 + $0x160] sm:$0xff] %v999_v52  ;;  %1232 = vst [vmem:[%s2466_s10 + $0x168] sm:$0xff] %v1000_v57  ;;  %v1045_v7 = vmul.f32 %v1528_v1, %v2061_v44  ;;  %v1046_v8 = vmul.f32 %v1528_v1, %v2064_v47  ;;  %v1047_v9 = vmul.f32 %v1528_v1, %v2067_v31 }
 0x38a   :  { %1233 = vst [vmem:[%s2466_s10 + $0x170] sm:$0xff] %v1001_v51  ;;  %1234 = vst [vmem:[%s2466_s10 + $0x178] sm:$0xff] %v1002_v53  ;;  %v1048_v10 = vmul.f32 %v1528_v1, %v2070_v42  ;;  %v1049_v15 = vadd.f32 %v1041_v32, %v2025_v17  ;;  %v1050_v55 = vadd.f32 %v1042_v54, %v2028_v28 }
 0x38b   :  { %v1051_v16 = vadd.f32 %v1043_v60, %v2031_v29  ;;  %v1052_v18 = vadd.f32 %v1044_v0, %v2037_v35  ;;  %v1053_v19 = vadd.f32 %v1045_v7, %v2034_v33  ;;  %v1054_v20 = vadd.f32 %v1046_v8, %v2040_v24 }
 0x38c   :  { %v1055_v58 = vadd.f32 %v1047_v9, %v2043_v36  ;;  %v1056_v11 = vadd.f32 %v1048_v10, %v2046_v37  ;;  %1243 = vst [vmem:[%s2466_s10 + $0x180] sm:$0xff] %v1049_v15  ;;  %1244 = vst [vmem:[%s2466_s10 + $0x188] sm:$0xff] %v1050_v55  ;;  %v1095_v1 = vmul.f32 %v1539_v5, %v2049_v38 }
 0x38d   :  { %1245 = vst [vmem:[%s2466_s10 + $0x190] sm:$0xff] %v1051_v16  ;;  %1246 = vst [vmem:[%s2466_s10 + $0x198] sm:$0xff] %v1052_v18  ;;  %v1096_v12 = vmul.f32 %v1539_v5, %v2052_v39  ;;  %v1097_v21 = vmul.f32 %v1539_v5, %v2055_v40  ;;  %v1098_v61 = vmul.f32 %v1539_v5, %v2058_v41 }
 0x38e   :  { %1247 = vst [vmem:[%s2466_s10 + $0x1a0] sm:$0xff] %v1053_v19  ;;  %1248 = vst [vmem:[%s2466_s10 + $0x1a8] sm:$0xff] %v1054_v20  ;;  %v1099_v38 = vmul.f32 %v1539_v5, %v2061_v44  ;;  %v1100_v39 = vmul.f32 %v1539_v5, %v2064_v47  ;;  %v1101_v40 = vmul.f32 %v1539_v5, %v2067_v31 }
 0x38f   :  { %1249 = vst [vmem:[%s2466_s10 + $0x1b0] sm:$0xff] %v1055_v58  ;;  %1250 = vst [vmem:[%s2466_s10 + $0x1b8] sm:$0xff] %v1056_v11  ;;  %v1102_v41 = vmul.f32 %v1539_v5, %v2070_v42  ;;  %v1103_v62 = vadd.f32 %v1095_v1, %v2025_v17  ;;  %v1104_v63 = vadd.f32 %v1096_v12, %v2028_v28 }
 0x390   :  { %v1105_v43 = vadd.f32 %v1097_v21, %v2031_v29  ;;  %v1106_v49 = vadd.f32 %v1098_v61, %v2037_v35  ;;  %v1107_v2 = vadd.f32 %v1099_v38, %v2034_v33  ;;  %v1108_v44 = vadd.f32 %v1100_v39, %v2040_v24 }
 0x391   :  { %v1109_v47 = vadd.f32 %v1101_v40, %v2043_v36  ;;  %v1110_v3 = vadd.f32 %v1102_v41, %v2046_v37  ;;  %1259 = vst [vmem:[%s2466_s10 + $0x1c0] sm:$0xff] %v1103_v62  ;;  %1260 = vst [vmem:[%s2466_s10 + $0x1c8] sm:$0xff] %v1104_v63 }
 0x392   :  { %1261 = vst [vmem:[%s2466_s10 + $0x1d0] sm:$0xff] %v1105_v43  ;;  %1262 = vst [vmem:[%s2466_s10 + $0x1d8] sm:$0xff] %v1106_v49 }
 0x393   :  { %1263 = vst [vmem:[%s2466_s10 + $0x1e0] sm:$0xff] %v1107_v2  ;;  %1264 = vst [vmem:[%s2466_s10 + $0x1e8] sm:$0xff] %v1108_v44 }
 0x394   :  { %1265 = vst [vmem:[%s2466_s10 + $0x1f0] sm:$0xff] %v1109_v47  ;;  %1266 = vst [vmem:[%s2466_s10 + $0x1f8] sm:$0xff] %v1110_v3 }
 0x395   :  { %1153 = vsyncpa [#allocation4], 1 }

</bundles_post_ra>
